<compile_context>
chip_gen: v6e
topology: v6e:2x2x1
jax: 0.10.0
libtpu: 0.0.40
codegen_flags: <defaults>
</compile_context>

<pallas_src>
import functools

import jax
import jax.numpy as jnp
from jax import lax
from jax.experimental import pallas as pl
from jax.experimental.pallas import tpu as pltpu


_LANES = 128          # lane width; rounding unit for hidden dims & pred tiles
_BF16_SUBLANES = 16   # bf16 packs 16 rows per sublane group
_TILE_ROWS = 512      # target batch rows per grid step (weights grid-resident)


def _cdiv(a, b):
    return -(-a // b)


def _round_up(x, m):
    return ((x + m - 1) // m) * m


# ---------------------------------------------------------------------------
# In-kernel math helpers (operate on loaded jnp values)
# ---------------------------------------------------------------------------

def _leaky_relu(x):
    return jnp.where(x > 0, x, 0.2 * x)


def _generator_math(gx_bf16, gw1, gb1, gw2, gb2, out_dtype):
    """noise(+cond) -> tanh image; bf16 MXU operands, f32 accumulate."""
    h = jnp.dot(gx_bf16, gw1, preferred_element_type=jnp.float32) + gb1
    h = _leaky_relu(h)
    img = jnp.dot(h.astype(jnp.bfloat16), gw2,
                  preferred_element_type=jnp.float32) + gb2
    # cast immediately so the f32 [tb, img_dim] intermediate dies here
    return jnp.tanh(img).astype(out_dtype)


def _disc_hidden(x_bf16, dw1_img, cond_bf16, dw1_cond, db1):
    """LeakyReLU(x @ W1_img + cond @ W1_cond + b1) with no in-kernel concat."""
    h = jnp.dot(x_bf16, dw1_img, preferred_element_type=jnp.float32)
    if cond_bf16 is not None:
        h = h + jnp.dot(cond_bf16, dw1_cond, preferred_element_type=jnp.float32)
    return _leaky_relu(h + db1)


def _disc_head(h, dw2_row, db2):
    """sigmoid(h @ w2 + b2) produced lane-dense as [1, tb].

    Contract both operands on their last (hidden) dim (same dot_general form
    as q @ k^T in flash attention) so the per-row predictions land directly on
    the lane axis -> unmasked lane-dense vst, no [tb,1]->[1,tb] relayout and
    ~128x less HBM writeback than a broadcast [tb,128] store.
    """
    logit = lax.dot_general(dw2_row, h, (((1,), (1,)), ((), ())),
                            preferred_element_type=jnp.float32) + db2
    return jax.nn.sigmoid(logit)                      # f32 [1, tb]


def _run_if_valid(body, valid_tiles, grid_t):
    """Skip a whole gen/disc pipeline on grid steps past the valid batch."""
    if valid_tiles >= grid_t:
        body()
    else:
        pl.when(pl.program_id(0) < valid_tiles)(body)


# ---------------------------------------------------------------------------
# Pallas kernels
# ---------------------------------------------------------------------------

def _gan_both_kernel(*refs, has_cond, fake_tiles, real_tiles, grid_t):
    """noise -> fake image (VMEM resident) -> disc(fake); disc(real). One launch."""
    if has_cond:
        (gx_ref, fcond_ref, rimg_ref, rcond_ref,
         gw1_ref, gb1_ref, gw2_ref, gb2_ref,
         dw1i_ref, dw1c_ref, db1_ref, dw2_ref, db2_ref,
         fpred_ref, rpred_ref) = refs
    else:
        (gx_ref, rimg_ref,
         gw1_ref, gb1_ref, gw2_ref, gb2_ref,
         dw1i_ref, db1_ref, dw2_ref, db2_ref,
         fpred_ref, rpred_ref) = refs
        fcond_ref = rcond_ref = dw1c_ref = None

    db2 = db2_ref[0]

    def fake_path():
        fake = _generator_math(gx_ref[...], gw1_ref[...], gb1_ref[...],
                               gw2_ref[...], gb2_ref[...], jnp.bfloat16)
        h = _disc_hidden(fake, dw1i_ref[...],
                         None if fcond_ref is None else fcond_ref[...],
                         None if dw1c_ref is None else dw1c_ref[...],
                         db1_ref[...])
        fpred_ref[...] = _disc_head(h, dw2_ref[...], db2)

    def real_path():
        h = _disc_hidden(rimg_ref[...], dw1i_ref[...],
                         None if rcond_ref is None else rcond_ref[...],
                         None if dw1c_ref is None else dw1c_ref[...],
                         db1_ref[...])
        rpred_ref[...] = _disc_head(h, dw2_ref[...], db2)

    _run_if_valid(fake_path, fake_tiles, grid_t)
    _run_if_valid(real_path, real_tiles, grid_t)


def _gen_disc_kernel(*refs, has_cond):
    """noise -> fake image -> disc(fake), fully fused (noise-only forward)."""
    if has_cond:
        (gx_ref, fcond_ref,
         gw1_ref, gb1_ref, gw2_ref, gb2_ref,
         dw1i_ref, dw1c_ref, db1_ref, dw2_ref, db2_ref, fpred_ref) = refs
    else:
        (gx_ref,
         gw1_ref, gb1_ref, gw2_ref, gb2_ref,
         dw1i_ref, db1_ref, dw2_ref, db2_ref, fpred_ref) = refs
        fcond_ref = dw1c_ref = None

    fake = _generator_math(gx_ref[...], gw1_ref[...], gb1_ref[...],
                           gw2_ref[...], gb2_ref[...], jnp.bfloat16)
    h = _disc_hidden(fake, dw1i_ref[...],
                     None if fcond_ref is None else fcond_ref[...],
                     None if dw1c_ref is None else dw1c_ref[...],
                     db1_ref[...])
    fpred_ref[...] = _disc_head(h, dw2_ref[...], db2_ref[0])


def _disc_kernel(*refs, has_cond):
    """discriminator only (real-image-only forward)."""
    if has_cond:
        (x_ref, cond_ref, dw1i_ref, dw1c_ref, db1_ref, dw2_ref, db2_ref,
         pred_ref) = refs
    else:
        (x_ref, dw1i_ref, db1_ref, dw2_ref, db2_ref, pred_ref) = refs
        cond_ref = dw1c_ref = None

    h = _disc_hidden(x_ref[...], dw1i_ref[...],
                     None if cond_ref is None else cond_ref[...],
                     None if dw1c_ref is None else dw1c_ref[...],
                     db1_ref[...])
    pred_ref[...] = _disc_head(h, dw2_ref[...], db2_ref[0])


def _gen_kernel(gx_ref, gw1_ref, gb1_ref, gw2_ref, gb2_ref, img_ref):
    """generator only (inferencer)."""
    img_ref[...] = _generator_math(gx_ref[...], gw1_ref[...], gb1_ref[...],
                                   gw2_ref[...], gb2_ref[...], img_ref.dtype)


# ---------------------------------------------------------------------------
# BlockSpec / tiling helpers
# ---------------------------------------------------------------------------

def _batch_spec(tb, width):
    return pl.BlockSpec((tb, width), lambda i: (i, 0))


def _rep_spec(shape):
    # full-array block, same block index every grid step -> DMA'd once
    return pl.BlockSpec(shape, lambda i: (0, 0))


def _pred_spec(tb):
    # lane-dense [1, tb] prediction blocks (tb is a multiple of 128)
    return pl.BlockSpec((1, tb), lambda i: (0, i))


_SMEM_SPEC = pl.BlockSpec(memory_space=pltpu.MemorySpace.SMEM)
_CPARAMS = pltpu.CompilerParams(
    dimension_semantics=("parallel",),
    vmem_limit_bytes=48 * 1024 * 1024,   # < v7x's 64 MiB physical, > defaults
)


def _pad_rows(x, n_pad):
    n = x.shape[0]
    if n_pad == n:
        return x
    return jnp.pad(x, ((0, n_pad - n), (0, 0)))


def _grid_steps(nmax):
    """~_TILE_ROWS rows per step; >=2 steps once there is more than one
    128-row tile of work so v7x's two TensorCores both get work."""
    t = _cdiv(nmax, _TILE_ROWS)
    if nmax > _LANES:
        t = max(t, 2)
    return max(t, 1)


def _pred_tiling(n, t):
    """rows/tile (multiple of 128 -> lane-dense pred stores, bf16 packing),
    padded batch, and the number of tiles that contain valid rows."""
    tb = _round_up(max(1, _cdiv(n, t)), _LANES)
    return tb, tb * t, _cdiv(n, tb)


# ---------------------------------------------------------------------------
# GAN wrapper (plain-JAX glue: concat / flatten / pad, no heavy compute)
# ---------------------------------------------------------------------------

class GANPallas:
    def __init__(self, noise_dim, cond_dim, gen_hidden, disc_hidden, img_hw, key):
        self.noise_dim = noise_dim
        self.cond_dim = cond_dim
        self.gen_hidden = gen_hidden
        self.disc_hidden = disc_hidden
        self.img_hw = img_hw
        self.img_dim = img_hw * img_hw

        # hidden dims zero-padded to a multiple of 128 lanes; padded columns /
        # rows are zero so results are numerically identical to the unpadded
        # nets while activations stay lane-dense for the MXU/VPU.
        gh = _round_up(gen_hidden, _LANES)
        dh = _round_up(disc_hidden, _LANES)

        def pad_cols(w, width):
            return jnp.pad(w, ((0, 0), (0, width - w.shape[1])))

        def pad_rows(w, rows):
            return jnp.pad(w, ((0, rows - w.shape[0]), (0, 0)))

        ks = jax.random.split(key, 5)
        g_in = noise_dim + cond_dim

        # MXU operands stored in bf16 (halves weight DMA; intentional
        # quantization of the f32 reference); biases stay f32.
        self.g_w1 = pad_cols(
            0.05 * jax.random.normal(ks[0], (g_in, gen_hidden), jnp.float32),
            gh).astype(jnp.bfloat16)
        self.g_b1 = jnp.zeros((1, gh), jnp.float32)
        self.g_w2 = pad_rows(
            0.05 * jax.random.normal(ks[1], (gen_hidden, self.img_dim), jnp.float32),
            gh).astype(jnp.bfloat16)
        self.g_b2 = jnp.zeros((1, self.img_dim), jnp.float32)

        # discriminator W1 stored pre-split (image rows / condition rows) so no
        # slicing or concat is ever needed in-kernel.
        self.d_w1_img = pad_cols(
            0.05 * jax.random.normal(ks[2], (self.img_dim, disc_hidden), jnp.float32),
            dh).astype(jnp.bfloat16)
        self.d_w1_cond = None
        if cond_dim > 0:
            self.d_w1_cond = pad_cols(
                0.05 * jax.random.normal(ks[3], (cond_dim, disc_hidden), jnp.float32),
                dh).astype(jnp.bfloat16)
        self.d_b1 = jnp.zeros((1, dh), jnp.float32)
        # final layer kept as an f32 row; applied as w2 . h^T on the MXU so the
        # predictions come out lane-dense.
        self.d_w2_row = pad_cols(
            0.05 * jax.random.normal(ks[4], (1, disc_hidden), jnp.float32), dh)
        self.d_b2 = jnp.zeros((1,), jnp.float32)          # SMEM scalar

    # ---- input plumbing ----------------------------------------------------

    def _gen_input(self, noise, condition):
        x = noise.astype(jnp.float32)
        if condition is not None:
            x = jnp.concatenate([x, condition.astype(jnp.float32)], axis=-1)
        return x.astype(jnp.bfloat16)

    def _img_input(self, imgs):
        m = imgs.shape[0]
        return imgs.astype(jnp.float32).reshape(m, -1).astype(jnp.bfloat16)

    def _cond_input(self, condition, n_pad):
        return _pad_rows(condition.astype(jnp.bfloat16), n_pad)

    # ---- fused forward paths ----------------------------------------------

    def _forward_both(self, noise, real_imgs, condition):
        has_cond = condition is not None
        if has_cond:
            assert self.cond_dim > 0, "model was built without a condition dim"
        n, m = noise.shape[0], real_imgs.shape[0]
        t = _grid_steps(max(n, m))
        tb_g, n_pad, fake_tiles = _pred_tiling(n, t)
        tb_r, m_pad, real_tiles = _pred_tiling(m, t)

        gx = _pad_rows(self._gen_input(noise, condition), n_pad)
        rx = _pad_rows(self._img_input(real_imgs), m_pad)

        inputs, specs = [gx], [_batch_spec(tb_g, gx.shape[1])]
        if has_cond:
            inputs.append(self._cond_input(condition, n_pad))
            specs.append(_batch_spec(tb_g, self.cond_dim))
        inputs.append(rx)
        specs.append(_batch_spec(tb_r, rx.shape[1]))
        if has_cond:
            inputs.append(self._cond_input(condition, m_pad))
            specs.append(_batch_spec(tb_r, self.cond_dim))

        weights = [self.g_w1, self.g_b1, self.g_w2, self.g_b2, self.d_w1_img]
        if has_cond:
            weights.append(self.d_w1_cond)
        weights += [self.d_b1, self.d_w2_row]
        inputs += weights
        specs += [_rep_spec(w.shape) for w in weights]
        inputs.append(self.d_b2)
        specs.append(_SMEM_SPEC)

        kernel = functools.partial(_gan_both_kernel, has_cond=has_cond,
                                   fake_tiles=fake_tiles, real_tiles=real_tiles,
                                   grid_t=t)
        fpred, rpred = pl.pallas_call(
            kernel,
            grid=(t,),
            out_shape=(jax.ShapeDtypeStruct((1, n_pad), jnp.float32),
                       jax.ShapeDtypeStruct((1, m_pad), jnp.float32)),
            in_specs=specs,
            out_specs=(_pred_spec(tb_g), _pred_spec(tb_r)),
            compiler_params=_CPARAMS,
        )(*inputs)
        return fpred[0, :n].reshape(n, 1), rpred[0, :m].reshape(m, 1)

    def _forward_fake(self, noise, condition):
        has_cond = condition is not None
        if has_cond:
            assert self.cond_dim > 0
        n = noise.shape[0]
        t = _grid_steps(n)
        tb, n_pad, _ = _pred_tiling(n, t)

        gx = _pad_rows(self._gen_input(noise, condition), n_pad)
        inputs, specs = [gx], [_batch_spec(tb, gx.shape[1])]
        if has_cond:
            inputs.append(self._cond_input(condition, n_pad))
            specs.append(_batch_spec(tb, self.cond_dim))
        weights = [self.g_w1, self.g_b1, self.g_w2, self.g_b2, self.d_w1_img]
        if has_cond:
            weights.append(self.d_w1_cond)
        weights += [self.d_b1, self.d_w2_row]
        inputs += weights
        specs += [_rep_spec(w.shape) for w in weights]
        inputs.append(self.d_b2)
        specs.append(_SMEM_SPEC)

        fpred = pl.pallas_call(
            functools.partial(_gen_disc_kernel, has_cond=has_cond),
            grid=(t,),
            out_shape=jax.ShapeDtypeStruct((1, n_pad), jnp.float32),
            in_specs=specs,
            out_specs=_pred_spec(tb),
            compiler_params=_CPARAMS,
        )(*inputs)
        return fpred[0, :n].reshape(n, 1)

    def _forward_real(self, real_imgs, condition):
        has_cond = condition is not None
        if has_cond:
            assert self.cond_dim > 0
        m = real_imgs.shape[0]
        t = _grid_steps(m)
        tb, m_pad, _ = _pred_tiling(m, t)

        rx = _pad_rows(self._img_input(real_imgs), m_pad)
        inputs, specs = [rx], [_batch_spec(tb, rx.shape[1])]
        if has_cond:
            inputs.append(self._cond_input(condition, m_pad))
            specs.append(_batch_spec(tb, self.cond_dim))
        weights = [self.d_w1_img]
        if has_cond:
            weights.append(self.d_w1_cond)
        weights += [self.d_b1, self.d_w2_row]
        inputs += weights
        specs += [_rep_spec(w.shape) for w in weights]
        inputs.append(self.d_b2)
        specs.append(_SMEM_SPEC)

        rpred = pl.pallas_call(
            functools.partial(_disc_kernel, has_cond=has_cond),
            grid=(t,),
            out_shape=jax.ShapeDtypeStruct((1, m_pad), jnp.float32),
            in_specs=specs,
            out_specs=_pred_spec(tb),
            compiler_params=_CPARAMS,
        )(*inputs)
        return rpred[0, :m].reshape(m, 1)

    # ---- public API matching the PyTorch module ----------------------------

    def forward(self, noise=None, real_imgs=None, condition=None):
        assert noise is not None or real_imgs is not None, \
            'Either noise or real_image must be provided'
        gen_preds, real_preds = None, None
        if noise is not None and real_imgs is not None:
            gen_preds, real_preds = self._forward_both(noise, real_imgs, condition)
        elif noise is not None:
            gen_preds = self._forward_fake(noise, condition)
        else:
            real_preds = self._forward_real(real_imgs, condition)
        return gen_preds, real_preds

    def inferencer(self, noise, condition=None):
        n = noise.shape[0]
        t = _grid_steps(n)
        # image output is stored per-row; only bf16 sublane packing matters here
        tb = _round_up(max(1, _cdiv(n, t)), _BF16_SUBLANES)
        n_pad = tb * t
        gx = _pad_rows(self._gen_input(noise, condition), n_pad)

        fake = pl.pallas_call(
            _gen_kernel,
            grid=(t,),
            out_shape=jax.ShapeDtypeStruct((n_pad, self.img_dim), jnp.float32),
            in_specs=[_batch_spec(tb, gx.shape[1]),
                      _rep_spec(self.g_w1.shape), _rep_spec(self.g_b1.shape),
                      _rep_spec(self.g_w2.shape), _rep_spec(self.g_b2.shape)],
            out_specs=pl.BlockSpec((tb, self.img_dim), lambda i: (i, 0)),
            compiler_params=_CPARAMS,
        )(gx, self.g_w1, self.g_b1, self.g_w2, self.g_b2)
        return fake[:n].reshape(n, self.img_hw, self.img_hw)


# ---------------------------------------------------------------------------
# Demo
# ---------------------------------------------------------------------------

if __name__ == "__main__":
    key = jax.random.PRNGKey(0)
    k_param, k_noise, k_real, k_noise2, k_real2 = jax.random.split(key, 5)

    noise_dim = 32
    gen_hidden = 64      # padded to 128 lanes internally (zero pad)
    disc_hidden = 64     # padded to 128 lanes internally (zero pad)
    img_hw = 16          # fake/real images are [batch, 16, 16]
    cond_dim = 0         # condition=None path; cond matmul done in-kernel if set
    N, M = 8, 8

    gan = GANPallas(noise_dim, cond_dim, gen_hidden, disc_hidden, img_hw, k_param)

    noise = jax.random.normal(k_noise, (N, noise_dim), jnp.float32)
    real_imgs = jax.random.normal(k_real, (M, img_hw, img_hw), jnp.float32)

    # fully fused path (one kernel launch for gen + disc(fake) + disc(real))
    gen_preds, real_preds = gan.forward(noise=noise, real_imgs=real_imgs,
                                        condition=None)
    jax.block_until_ready(gen_preds)
    jax.block_until_ready(real_preds)

    assert gen_preds.shape == (N, 1)
    assert real_preds.shape == (M, 1)
    assert bool(jnp.all(jnp.isfinite(gen_preds)))
    assert bool(jnp.all(jnp.isfinite(real_preds)))
    assert bool(jnp.all((gen_preds >= 0) & (gen_preds <= 1)))
    assert bool(jnp.all((real_preds >= 0) & (real_preds <= 1)))

    # single-input paths + inferencer, cross-checked against the fused path
    only_fake, none_r = gan.forward(noise=noise)
    none_f, only_real = gan.forward(real_imgs=real_imgs)
    assert none_r is None and none_f is None
    jax.block_until_ready(only_fake)
    jax.block_until_ready(only_real)
    assert bool(jnp.allclose(only_fake, gen_preds, atol=1e-3))
    assert bool(jnp.allclose(only_real, real_preds, atol=1e-3))

    # imbalanced fake/real batches: exercises multi-tile grid + pl.when guards
    N2, M2 = 4, 200
    noise2 = jax.random.normal(k_noise2, (N2, noise_dim), jnp.float32)
    real2 = jax.random.normal(k_real2, (M2, img_hw, img_hw), jnp.float32)
    gp2, rp2 = gan.forward(noise=noise2, real_imgs=real2, condition=None)
    jax.block_until_ready(gp2)
    jax.block_until_ready(rp2)
    assert gp2.shape == (N2, 1) and rp2.shape == (M2, 1)
    assert bool(jnp.all(jnp.isfinite(gp2))) and bool(jnp.all(jnp.isfinite(rp2)))
    gp2_only, _ = gan.forward(noise=noise2)
    _, rp2_only = gan.forward(real_imgs=real2)
    assert bool(jnp.allclose(gp2_only, gp2, atol=1e-3))
    assert bool(jnp.allclose(rp2_only, rp2, atol=1e-3))

    fake_images = gan.inferencer(noise, None)
    jax.block_until_ready(fake_images)
    assert fake_images.shape == (N, img_hw, img_hw)
    assert bool(jnp.all(jnp.isfinite(fake_images)))

    print("KERNEL_OK")
</pallas_src>

<mosaic_0001>
module attributes {stable_mosaic.version = 11 : i64} {
  func.func @_gan_both_kernel(%arg0: i32, %arg1: memref<128x32xbf16, #tpu.memory_space<vmem>>, %arg2: memref<128x256xbf16, #tpu.memory_space<vmem>>, %arg3: memref<32x128xbf16, #tpu.memory_space<vmem>>, %arg4: memref<1x128xf32, #tpu.memory_space<vmem>>, %arg5: memref<128x256xbf16, #tpu.memory_space<vmem>>, %arg6: memref<1x256xf32, #tpu.memory_space<vmem>>, %arg7: memref<256x128xbf16, #tpu.memory_space<vmem>>, %arg8: memref<1x128xf32, #tpu.memory_space<vmem>>, %arg9: memref<1x128xf32, #tpu.memory_space<vmem>>, %arg10: memref<1xf32, #tpu.memory_space<smem>>, %arg11: memref<1x128xf32, #tpu.memory_space<vmem>>, %arg12: memref<1x128xf32, #tpu.memory_space<vmem>>) attributes {dimension_semantics = [#tpu.dimension_semantics<parallel>], iteration_bounds = array<i64: 1>, scalar_prefetch = 0 : i64, scratch_operands = 0 : i64, tpu.core_type = #tpu.core_type<tc>, window_params = [{transform_indices = @transform_0, window_bounds = array<i64: 128, 32>}, {transform_indices = @transform_1, window_bounds = array<i64: 128, 256>}, {pipeline_mode = #tpu.pipeline_mode<synchronous>, transform_indices = @transform_2, window_bounds = array<i64: 32, 128>}, {pipeline_mode = #tpu.pipeline_mode<synchronous>, transform_indices = @transform_3, window_bounds = array<i64: 1, 128>}, {pipeline_mode = #tpu.pipeline_mode<synchronous>, transform_indices = @transform_4, window_bounds = array<i64: 128, 256>}, {pipeline_mode = #tpu.pipeline_mode<synchronous>, transform_indices = @transform_5, window_bounds = array<i64: 1, 256>}, {pipeline_mode = #tpu.pipeline_mode<synchronous>, transform_indices = @transform_6, window_bounds = array<i64: 256, 128>}, {pipeline_mode = #tpu.pipeline_mode<synchronous>, transform_indices = @transform_7, window_bounds = array<i64: 1, 128>}, {pipeline_mode = #tpu.pipeline_mode<synchronous>, transform_indices = @transform_8, window_bounds = array<i64: 1, 128>}, {transform_indices = @transform_9, window_bounds = array<i64: 1>}, {transform_indices = @transform_10, window_bounds = array<i64: 1, 128>}, {transform_indices = @transform_11, window_bounds = array<i64: 1, 128>}]} {
    %c0 = arith.constant 0 : index
    %0 = memref.load %arg10[%c0] : memref<1xf32, #tpu.memory_space<smem>>
    %c0_0 = arith.constant 0 : index
    %c0_1 = arith.constant 0 : index
    %1 = vector.load %arg1[%c0_0, %c0_1] : memref<128x32xbf16, #tpu.memory_space<vmem>>, vector<128x32xbf16>
    %c0_2 = arith.constant 0 : index
    %c0_3 = arith.constant 0 : index
    %2 = vector.load %arg3[%c0_2, %c0_3] : memref<32x128xbf16, #tpu.memory_space<vmem>>, vector<32x128xbf16>
    %c0_4 = arith.constant 0 : index
    %c0_5 = arith.constant 0 : index
    %3 = vector.load %arg4[%c0_4, %c0_5] : memref<1x128xf32, #tpu.memory_space<vmem>>, vector<1x128xf32>
    %c0_6 = arith.constant 0 : index
    %c0_7 = arith.constant 0 : index
    %4 = vector.load %arg5[%c0_6, %c0_7] : memref<128x256xbf16, #tpu.memory_space<vmem>>, vector<128x256xbf16>
    %c0_8 = arith.constant 0 : index
    %c0_9 = arith.constant 0 : index
    %5 = vector.load %arg6[%c0_8, %c0_9] : memref<1x256xf32, #tpu.memory_space<vmem>>, vector<1x256xf32>
    %cst = arith.constant dense<0.000000e+00> : vector<128x128xf32>
    %6 = tpu.matmul %1, %2, %cst {dimension_numbers = #tpu.dot_dimension_numbers<[1], [0], [0], [1], [0, 0, 1, 1], [], []>} : vector<128x32xbf16>, vector<32x128xbf16>, vector<128x128xf32> -> vector<128x128xf32>
    %7 = vector.broadcast %3 : vector<1x128xf32> to vector<128x128xf32>
    %8 = arith.addf %6, %7 : vector<128x128xf32>
    %cst_10 = arith.constant 0.000000e+00 : f32
    %9 = vector.broadcast %cst_10 : f32 to vector<128x128xf32>
    %10 = arith.cmpf ogt, %8, %9 : vector<128x128xf32>
    %cst_11 = arith.constant 2.000000e-01 : f32
    %11 = vector.broadcast %cst_11 : f32 to vector<128x128xf32>
    %12 = arith.mulf %11, %8 : vector<128x128xf32>
    %13 = arith.select %10, %8, %12 : vector<128x128xi1>, vector<128x128xf32>
    %14 = arith.truncf %13 : vector<128x128xf32> to vector<128x128xbf16>
    %cst_12 = arith.constant dense<0.000000e+00> : vector<128x256xf32>
    %15 = tpu.matmul %14, %4, %cst_12 {dimension_numbers = #tpu.dot_dimension_numbers<[1], [0], [0], [1], [0, 0, 1, 1], [], []>} : vector<128x128xbf16>, vector<128x256xbf16>, vector<128x256xf32> -> vector<128x256xf32>
    %16 = vector.broadcast %5 : vector<1x256xf32> to vector<128x256xf32>
    %17 = arith.addf %15, %16 : vector<128x256xf32>
    %18 = math.tanh %17 : vector<128x256xf32>
    %19 = arith.truncf %18 : vector<128x256xf32> to vector<128x256xbf16>
    %c0_13 = arith.constant 0 : index
    %c0_14 = arith.constant 0 : index
    %20 = vector.load %arg7[%c0_13, %c0_14] : memref<256x128xbf16, #tpu.memory_space<vmem>>, vector<256x128xbf16>
    %c0_15 = arith.constant 0 : index
    %c0_16 = arith.constant 0 : index
    %21 = vector.load %arg8[%c0_15, %c0_16] : memref<1x128xf32, #tpu.memory_space<vmem>>, vector<1x128xf32>
    %cst_17 = arith.constant dense<0.000000e+00> : vector<128x128xf32>
    %22 = tpu.matmul %19, %20, %cst_17 {dimension_numbers = #tpu.dot_dimension_numbers<[1], [0], [0], [1], [0, 0, 1, 1], [], []>} : vector<128x256xbf16>, vector<256x128xbf16>, vector<128x128xf32> -> vector<128x128xf32>
    %23 = vector.broadcast %21 : vector<1x128xf32> to vector<128x128xf32>
    %24 = arith.addf %22, %23 : vector<128x128xf32>
    %cst_18 = arith.constant 0.000000e+00 : f32
    %25 = vector.broadcast %cst_18 : f32 to vector<128x128xf32>
    %26 = arith.cmpf ogt, %24, %25 : vector<128x128xf32>
    %cst_19 = arith.constant 2.000000e-01 : f32
    %27 = vector.broadcast %cst_19 : f32 to vector<128x128xf32>
    %28 = arith.mulf %27, %24 : vector<128x128xf32>
    %29 = arith.select %26, %24, %28 : vector<128x128xi1>, vector<128x128xf32>
    %c0_20 = arith.constant 0 : index
    %c0_21 = arith.constant 0 : index
    %30 = vector.load %arg9[%c0_20, %c0_21] : memref<1x128xf32, #tpu.memory_space<vmem>>, vector<1x128xf32>
    %cst_22 = arith.constant dense<0.000000e+00> : vector<1x128xf32>
    %31 = tpu.matmul %30, %29, %cst_22 {dimension_numbers = #tpu.dot_dimension_numbers<[1], [1], [0], [0], [0, 0, 1, 0], [], []>} : vector<1x128xf32>, vector<128x128xf32>, vector<1x128xf32> -> vector<1x128xf32>
    %32 = vector.broadcast %0 : f32 to vector<1x128xf32>
    %33 = arith.addf %31, %32 : vector<1x128xf32>
    %34 = arith.negf %33 : vector<1x128xf32>
    %35 = math.exp %34 : vector<1x128xf32>
    %cst_23 = arith.constant 1.000000e+00 : f32
    %36 = vector.broadcast %cst_23 : f32 to vector<1x128xf32>
    %37 = arith.addf %36, %35 : vector<1x128xf32>
    %38 = arith.divf %36, %37 : vector<1x128xf32>
    %c0_24 = arith.constant 0 : index
    %c0_25 = arith.constant 0 : index
    %39 = vector.load %arg11[%c0_24, %c0_25] : memref<1x128xf32, #tpu.memory_space<vmem>>, vector<1x128xf32>
    tpu.vector_store %arg11[%c0_24, %c0_25], %38 {strides = array<i32>} : memref<1x128xf32, #tpu.memory_space<vmem>>, vector<1x128xf32>,
    %c0_26 = arith.constant 0 : index
    %c0_27 = arith.constant 0 : index
    %40 = vector.load %arg2[%c0_26, %c0_27] : memref<128x256xbf16, #tpu.memory_space<vmem>>, vector<128x256xbf16>
    %c0_28 = arith.constant 0 : index
    %c0_29 = arith.constant 0 : index
    %41 = vector.load %arg7[%c0_28, %c0_29] : memref<256x128xbf16, #tpu.memory_space<vmem>>, vector<256x128xbf16>
    %c0_30 = arith.constant 0 : index
    %c0_31 = arith.constant 0 : index
    %42 = vector.load %arg8[%c0_30, %c0_31] : memref<1x128xf32, #tpu.memory_space<vmem>>, vector<1x128xf32>
    %cst_32 = arith.constant dense<0.000000e+00> : vector<128x128xf32>
    %43 = tpu.matmul %40, %41, %cst_32 {dimension_numbers = #tpu.dot_dimension_numbers<[1], [0], [0], [1], [0, 0, 1, 1], [], []>} : vector<128x256xbf16>, vector<256x128xbf16>, vector<128x128xf32> -> vector<128x128xf32>
    %44 = vector.broadcast %42 : vector<1x128xf32> to vector<128x128xf32>
    %45 = arith.addf %43, %44 : vector<128x128xf32>
    %cst_33 = arith.constant 0.000000e+00 : f32
    %46 = vector.broadcast %cst_33 : f32 to vector<128x128xf32>
    %47 = arith.cmpf ogt, %45, %46 : vector<128x128xf32>
    %cst_34 = arith.constant 2.000000e-01 : f32
    %48 = vector.broadcast %cst_34 : f32 to vector<128x128xf32>
    %49 = arith.mulf %48, %45 : vector<128x128xf32>
    %50 = arith.select %47, %45, %49 : vector<128x128xi1>, vector<128x128xf32>
    %c0_35 = arith.constant 0 : index
    %c0_36 = arith.constant 0 : index
    %51 = vector.load %arg9[%c0_35, %c0_36] : memref<1x128xf32, #tpu.memory_space<vmem>>, vector<1x128xf32>
    %cst_37 = arith.constant dense<0.000000e+00> : vector<1x128xf32>
    %52 = tpu.matmul %51, %50, %cst_37 {dimension_numbers = #tpu.dot_dimension_numbers<[1], [1], [0], [0], [0, 0, 1, 0], [], []>} : vector<1x128xf32>, vector<128x128xf32>, vector<1x128xf32> -> vector<1x128xf32>
    %53 = vector.broadcast %0 : f32 to vector<1x128xf32>
    %54 = arith.addf %52, %53 : vector<1x128xf32>
    %55 = arith.negf %54 : vector<1x128xf32>
    %56 = math.exp %55 : vector<1x128xf32>
    %cst_38 = arith.constant 1.000000e+00 : f32
    %57 = vector.broadcast %cst_38 : f32 to vector<1x128xf32>
    %58 = arith.addf %57, %56 : vector<1x128xf32>
    %59 = arith.divf %57, %58 : vector<1x128xf32>
    %c0_39 = arith.constant 0 : index
    %c0_40 = arith.constant 0 : index
    %60 = vector.load %arg12[%c0_39, %c0_40] : memref<1x128xf32, #tpu.memory_space<vmem>>, vector<1x128xf32>
    tpu.vector_store %arg12[%c0_39, %c0_40], %59 {strides = array<i32>} : memref<1x128xf32, #tpu.memory_space<vmem>>, vector<1x128xf32>,
    return
  }
  func.func @transform_0(%arg0: i32) -> (i32, i32) {
    %c0_i32 = arith.constant 0 : i32
    %c0_i32_0 = arith.constant 0 : i32
    return %arg0, %c0_i32 : i32, i32
  }
  func.func @transform_1(%arg0: i32) -> (i32, i32) {
    %c0_i32 = arith.constant 0 : i32
    %c0_i32_0 = arith.constant 0 : i32
    return %arg0, %c0_i32 : i32, i32
  }
  func.func @transform_2(%arg0: i32) -> (i32, i32) {
    %c0_i32 = arith.constant 0 : i32
    %c0_i32_0 = arith.constant 0 : i32
    %c0_i32_1 = arith.constant 0 : i32
    return %c0_i32, %c0_i32_0 : i32, i32
  }
  func.func @transform_3(%arg0: i32) -> (i32, i32) {
    %c0_i32 = arith.constant 0 : i32
    %c0_i32_0 = arith.constant 0 : i32
    %c0_i32_1 = arith.constant 0 : i32
    return %c0_i32, %c0_i32_0 : i32, i32
  }
  func.func @transform_4(%arg0: i32) -> (i32, i32) {
    %c0_i32 = arith.constant 0 : i32
    %c0_i32_0 = arith.constant 0 : i32
    %c0_i32_1 = arith.constant 0 : i32
    return %c0_i32, %c0_i32_0 : i32, i32
  }
  func.func @transform_5(%arg0: i32) -> (i32, i32) {
    %c0_i32 = arith.constant 0 : i32
    %c0_i32_0 = arith.constant 0 : i32
    %c0_i32_1 = arith.constant 0 : i32
    return %c0_i32, %c0_i32_0 : i32, i32
  }
  func.func @transform_6(%arg0: i32) -> (i32, i32) {
    %c0_i32 = arith.constant 0 : i32
    %c0_i32_0 = arith.constant 0 : i32
    %c0_i32_1 = arith.constant 0 : i32
    return %c0_i32, %c0_i32_0 : i32, i32
  }
  func.func @transform_7(%arg0: i32) -> (i32, i32) {
    %c0_i32 = arith.constant 0 : i32
    %c0_i32_0 = arith.constant 0 : i32
    %c0_i32_1 = arith.constant 0 : i32
    return %c0_i32, %c0_i32_0 : i32, i32
  }
  func.func @transform_8(%arg0: i32) -> (i32, i32) {
    %c0_i32 = arith.constant 0 : i32
    %c0_i32_0 = arith.constant 0 : i32
    %c0_i32_1 = arith.constant 0 : i32
    return %c0_i32, %c0_i32_0 : i32, i32
  }
  func.func @transform_9(%arg0: i32) -> i32 {
    %c0_i32 = arith.constant 0 : i32
    %c0_i32_0 = arith.constant 0 : i32
    return %c0_i32 : i32
  }
  func.func @transform_10(%arg0: i32) -> (i32, i32) {
    %c0_i32 = arith.constant 0 : i32
    %c0_i32_0 = arith.constant 0 : i32
    return %c0_i32, %arg0 : i32, i32
  }
  func.func @transform_11(%arg0: i32) -> (i32, i32) {
    %c0_i32 = arith.constant 0 : i32
    %c0_i32_0 = arith.constant 0 : i32
    return %c0_i32, %arg0 : i32, i32
  }
}

</mosaic_0001>

<bundles_post_ra>
// kernel: tpu_custom_call.1
= control target key start
LH: loop header
LB: loop body
LE: loop exit
PB: predicated region body
PF: predicated region fallthrough
CT: control target
= control target key end

     0   :  { %18 = vsyncpa [#allocation4], 0  ;;  %s2430_s0 = inlined_call_operand.vmem [shape: bf16[128,32], index: 0, kind: input, shape index: {}]   ;;  %s2431_s1 = inlined_call_operand.hbm [shape: bf16[128,256], index: 1, kind: input, shape index: {}]   ;;  %s2432_s2 = inlined_call_operand.vmem [shape: bf16[32,128], index: 2, kind: input, shape index: {}]   ;;  %s2433_s3 = inlined_call_operand.vmem [shape: f32[1,128], index: 3, kind: input, shape index: {}]   ;;  %s2434_s4 = inlined_call_operand.hbm [shape: bf16[128,256], index: 4, kind: input, shape index: {}]   ;;  %s2435_s5 = inlined_call_operand.vmem [shape: f32[1,256], index: 5, kind: input, shape index: {}]   ;;  %s2436_s6 = inlined_call_operand.hbm [shape: bf16[256,128], index: 6, kind: input, shape index: {}]   ;;  %s2437_s7 = inlined_call_operand.vmem [shape: f32[1,128], index: 7, kind: input, shape index: {}]   ;;  %s2438_s8 = inlined_call_operand.vmem [shape: f32[1,128], index: 8, kind: input, shape index: {}]   ;;  %s2439_s9 = inlined_call_operand.<no memory space> [shape: f32[1], index: 9, kind: input, shape index: {}]   ;;  %s2440_s10 = inlined_call_operand.hbm [shape: f32[1,128], index: 10, kind: output, shape index: {0}]   ;;  %s2441_s11 = inlined_call_operand.hbm [shape: f32[1,128], index: 11, kind: output, shape index: {1}]  }
   0x1   :  { %19 = vsyncpa [#allocation7], 0 }
   0x2   :  { %20 = vsyncpa [#allocation5], 0 }
   0x3   :  { %21 = vsyncpa [#allocation11], 0  ;;  %s2083_s17 = smov [#allocation6]   ;;  %s2084_s19 = smov [#allocation3]  }
   0x4   :  { %s45_s18 = sshll.u32 %s2083_s17, 4  ;;  %s29_s20 = sshll.u32 %s2084_s19, 4  ;;  %s46_s18 = int_to_ptr.vmem [resolvable:$true] %s45_s18  ;;  %s30_s20 = int_to_ptr.vmem [resolvable:$true] %s29_s20 }
   0x5   :  { %s1983_s21 = scalar_lea.vmem %s46_s18, 2048  ;;  %p1988_p1 = scmp.lt.s32.totalorder %s46_s18, %s46_s18 }
   0x6   :  { %p1984_p0 = scmp.ne.s32.totalorder %s46_s18, %s1983_s21  ;;  %p1989_p2 = scmp.lt.s32.totalorder %s1983_s21, %s1983_s21 }
   0x8   :  { %p1990_p3 = por %p1989_p2, %p1988_p1 }
   0xa   :  { %p1991_p4 = pnand %p1990_p3, %p1984_p0 }
   0xc   :  { %1994 = shalt.err (!%p1991_p4)
}
   0xd   :  { %s2085_s22 = smov 128   ;;  %s2086_s23 = smov 8  }
   0xe   :  { %51 = dma.hbm_to_vmem [thread:$0]  %s2434_s4, 2048, %s46_s18, [#allocation7], %s2085_s22, %s2085_s22, %s2086_s23  }
   0xf   :  { %s2003_s26 = scalar_lea.vmem %s30_s20, 2048  ;;  %p2008_p6 = scmp.lt.s32.totalorder %s30_s20, %s30_s20 }
  0x10   :  { %p2004_p5 = scmp.ne.s32.totalorder %s30_s20, %s2003_s26  ;;  %p2009_p7 = scmp.lt.s32.totalorder %s2003_s26, %s2003_s26 }
  0x12   :  { %p2010_p8 = por %p2009_p7, %p2008_p6 }
  0x14   :  { %p2011_p9 = pnand %p2010_p8, %p2004_p5 }
  0x16   :  { %2014 = shalt.err (!%p2011_p9)
}
  0x17   :  { %35 = dma.hbm_to_vmem [thread:$0]  %s2431_s1, 2048, %s30_s20, [#allocation4], %s2085_s22, %s2085_s22, %s2086_s23  }
  0x18   :  { %s2087_s29 = smov [#allocation8]  }
  0x19   :  { %s59_s30 = sshll.u32 %s2087_s29, 4  ;;  %s60_s30 = int_to_ptr.vmem [resolvable:$true] %s59_s30 }
  0x1a   :  { %s2023_s12 = scalar_lea.vmem %s60_s30, 2048  ;;  %p2028_p11 = scmp.lt.s32.totalorder %s60_s30, %s60_s30 }
  0x1b   :  { %p2024_p10 = scmp.ne.s32.totalorder %s60_s30, %s2023_s12  ;;  %p2029_p12 = scmp.lt.s32.totalorder %s2023_s12, %s2023_s12 }
  0x1d   :  { %p2030_p13 = por %p2029_p12, %p2028_p11 }
  0x1f   :  { %p2031_p0 = pnand %p2030_p13, %p2024_p10 }
  0x21   :  { %2034 = shalt.err (!%p2031_p0)
}
  0x22   :  { %s2088_s4 = smov 64   ;;  %s2089_s13 = smov 4  }
  0x23   :  { %65 = dma.hbm_to_vmem [thread:$0]  %s2436_s6, 2048, %s60_s30, [#allocation7], %s2088_s4, %s2088_s4, %s2089_s13  }
  0x24   :  { %2075 = dma.done.wait [#allocation4], 2048  }
  0x25   :  { %2076 = vsyncadd [#allocation4], 4294965248 }
  0x26   :  { %2077 = dma.done.wait [#allocation7], 4096  }
  0x27   :  { %2078 = vsyncadd [#allocation7], 4294963200  ;;  %v1813_v0 = vld [vmem:[%s2432_s2 + $0x8] sm:$0xff]   ;;  %v1814_v1 = vld [vmem:[%s2432_s2] sm:$0xff]   ;;  %vm179_vm0 = vcmask 261120   ;;  %v2090_v26 = vmov 0  }
  0x28   :  { %1711 = vmatprep.subr.bf16.mxu0 %v1813_v0  ;;  %v1815_v2 = vld [vmem:[%s2430_s0] sm:$0xff]   ;;  %v1816_v3 = vld [vmem:[%s2430_s0 + $0x8] sm:$0xff]   ;;  %v1817_v4 = vld [vmem:[%s2430_s0 + $0x10] sm:$0xff]   ;;  %480 = vmatprep.mubr.bf16.mxu1 %v2090_v26  ;;  %s2093_s20 = smov [#allocation9]  }
  0x29   :  { %1712 = vmatpush3.bf16.msra.mxu0 %v1813_v0  ;;  %1715 = vmatprep.mubr.msk.bf16.mxu0 %vm179_vm0, %v1815_v2  ;;  %v1823_v5 = vld [vmem:[#allocation6 + $0x74] ss:$8 sps:$4 sm:$0xff]   ;;  %v1825_v6 = vld [vmem:[#allocation6 + $0x70] ss:$8 sps:$4 sm:$0xff]   ;;  %v1826_v7 = vld [vmem:[#allocation6 + $0x64] ss:$8 sps:$4 sm:$0xff]  }
  0x2a   :  { %1713 = vmatprep.subr.bf16.mxu0 %v1814_v1  ;;  %448 = vmatprep.subr.bf16.mxu1 %v1823_v5  ;;  %v1818_v8 = vld [vmem:[%s2430_s0 + $0x18] sm:$0xff]   ;;  %v1828_v9 = vld [vmem:[#allocation6 + $0x60] ss:$8 sps:$4 sm:$0xff]   ;;  %v1832_v13 = vld [vmem:[#allocation6 + $0x44] ss:$8 sps:$4 sm:$0xff]   ;;  %s1428_s6 = sshll.u32 %s2093_s20, 4  ;;  %s1429_s6 = int_to_ptr.vmem [resolvable:$true] %s1428_s6 }
  0x2b   :  { %449 = vmatpush1.bf16.msra.mxu1 %v1825_v6  ;;  %v1829_v10 = vld [vmem:[#allocation6 + $0x54] ss:$8 sps:$4 sm:$0xff]   ;;  %v1819_v11 = vld [vmem:[%s2430_s0 + $0x20] sm:$0xff]   ;;  %v1831_v12 = vld [vmem:[#allocation6 + $0x50] ss:$8 sps:$4 sm:$0xff]   ;;  %s2035_s21 = scalar_lea.vmem %s1429_s6, 16  ;;  %p2040_p2 = scmp.lt.s32.totalorder %s1429_s6, %s1429_s6 }
  0x2c   :  { %450 = vmatprep.subr.bf16.mxu1 %v1826_v7  ;;  %v1834_v14 = vld [vmem:[#allocation6 + $0x40] ss:$8 sps:$4 sm:$0xff]   ;;  %v1835_v16 = vld [vmem:[#allocation6 + $0x34] ss:$8 sps:$4 sm:$0xff]   ;;  %v1837_v18 = vld [vmem:[#allocation6 + $0x30] ss:$8 sps:$4 sm:$0xff]   ;;  %p2036_p1 = scmp.ne.s32.totalorder %s1429_s6, %s2035_s21 }
  0x2d   :  { %1714 = vmatpush3.bf16.msra.mxu0 %v1814_v1  ;;  %v1820_v15 = vld [vmem:[%s2430_s0 + $0x28] sm:$0xff]   ;;  %v1821_v17 = vld [vmem:[%s2430_s0 + $0x30] sm:$0xff]   ;;  %v1822_v19 = vld [vmem:[%s2430_s0 + $0x38] sm:$0xff]  }
  0x2e   :  { %v1838_v20 = vld [vmem:[#allocation6 + $0x24] ss:$8 sps:$4 sm:$0xff]   ;;  %v1840_v21 = vld [vmem:[#allocation6 + $0x20] ss:$8 sps:$4 sm:$0xff]   ;;  %v1841_v22 = vld [vmem:[#allocation6 + $0x14] ss:$8 sps:$4 sm:$0xff]  }
  0x2f   :  { %451 = vmatpush1.bf16.msra.mxu1 %v1828_v9  ;;  %v1843_v23 = vld [vmem:[#allocation6 + $0x10] ss:$8 sps:$4 sm:$0xff]   ;;  %v1844_v24 = vld [vmem:[#allocation6 + $0x4] ss:$8 sps:$4 sm:$0xff]   ;;  %v1846_v25 = vld [vmem:[#allocation6] ss:$8 sps:$4 sm:$0xff]  }
  0x30   :  { %1716 = vmatmul.mubr.msk.bf16.vlgmr.msra.gmra.mxu0 %vm179_vm0, %v1816_v3  ;;  %452 = vmatprep.subr.bf16.mxu1 %v1829_v10  ;;  %v1847_v27 = vld [vmem:[#allocation8 + $0x78] sm:$0xff]   ;;  %v1849_v29 = vld [vmem:[#allocation8 + $0x70] sm:$0xff]   ;;  %v2206_v32 = vld [vmem:[%s2433_s3] ss:$0 sm:$0xff] }
  0x31   :  { %1719 = vmatprep.mubr.msk.bf16.mxu0 %vm179_vm0, %v1817_v4  ;;  %v1848_v28 = vld [vmem:[#allocation8 + $0x38] sm:$0xff]   ;;  %1549 = vmatprep.subr.bf16.mxu0 %v1847_v27  ;;  %v1850_v30 = vld [vmem:[#allocation8 + $0x30] sm:$0xff]  }
  0x32   :  { %1550 = vmatpush3.bf16.msra.mxu0 %v1848_v28 }
  0x33   :  { %453 = vmatpush1.bf16.msra.mxu1 %v1831_v12  ;;  %1551 = vmatprep.subr.bf16.mxu0 %v1849_v29 }
  0x34   :  { %454 = vmatprep.subr.bf16.mxu1 %v1832_v13 }
  0x36   :  { %1552 = vmatpush3.bf16.msra.mxu0 %v1850_v30 }
  0x37   :  { %455 = vmatpush1.bf16.msra.mxu1 %v1834_v14 }
  0x38   :  { %1720 = vmatmul.mubr.msk.bf16.gmra.mxu0 %vm179_vm0, %v1818_v8  ;;  %456 = vmatprep.subr.bf16.mxu1 %v1835_v16 }
  0x39   :  { %1723 = vmatprep.mubr.msk.bf16.mxu0 %vm179_vm0, %v1819_v11 }
  0x3b   :  { %457 = vmatpush1.bf16.msra.mxu1 %v1837_v18 }
  0x3c   :  { %458 = vmatprep.subr.bf16.mxu1 %v1838_v20 }
  0x3f   :  { %459 = vmatpush1.bf16.msra.mxu1 %v1840_v21 }
  0x40   :  { %1724 = vmatmul.mubr.msk.bf16.gmra.mxu0 %vm179_vm0, %v1820_v15  ;;  %460 = vmatprep.subr.bf16.mxu1 %v1841_v22 }
  0x41   :  { %1727 = vmatprep.mubr.msk.bf16.mxu0 %vm179_vm0, %v1821_v17 }
  0x43   :  { %461 = vmatpush1.bf16.msra.mxu1 %v1843_v23 }
  0x44   :  { %462 = vmatprep.subr.bf16.mxu1 %v1844_v24 }
  0x47   :  { %463 = vmatpush1.bf16.msra.mxu1 %v1846_v25 }
  0x48   :  { %1728 = vmatmul.mubr.msk.bf16.gmra.mxu0 %vm179_vm0, %v1822_v19 }
  0xf0   :  { %v1717_v31 = vpop.f32.mrf.mxu0 }
  0xf1   :  { %v247_v43 = vadd.f32 %v1717_v31, %v2206_v32 }
  0xf2   :  { %v238_v33 = vpop.f32.mrf.mxu0 }
  0xf3   :  { %v239_v34 = vadd.f32 %v2206_v32, %v238_v33  ;;  %v319_v50 = vmul.f32 0.2, %v247_v43  ;;  %vm303_vm4 = vcmp.gt.f32.partialorder %v247_v43, 0.0 }
  0xf4   :  { %v1718_v35 = vpop.f32.mrf.mxu0 }
  0xf5   :  { %v317_v37 = vmul.f32 0.2, %v239_v34  ;;  %vm301_vm1 = vcmp.gt.f32.partialorder %v239_v34, 0.0  ;;  %v250_v40 = vadd.f32 %v1718_v35, %v2206_v32  ;;  %v335_v55 = vsel %vm303_vm4, %v247_v43, %v319_v50  ;;  %v1852_v43 = vld [vmem:[#allocation8 + $0x28] sm:$0xff]   ;;  %v1861_v50 = vld [vmem:[#allocation8 + $0x40] sm:$0xff]  }
  0xf6   :  { %v241_v36 = vpop.f32.mrf.mxu0 }
  0xf7   :  { %v242_v38 = vadd.f32 %v2206_v32, %v241_v36  ;;  %v333_v44 = vsel %vm301_vm1, %v239_v34, %v317_v37  ;;  %v320_v48 = vmul.f32 0.2, %v250_v40  ;;  %vm304_vm3 = vcmp.gt.f32.partialorder %v250_v40, 0.0 }
  0xf8   :  { %v1721_v39 = vpop.f32.mrf.mxu0  ;;  %vm2092_vm1 = vmmov 0  }
  0xf9   :  { %vm302_vm2 = vcmp.gt.f32.partialorder %v242_v38, 0.0  ;;  %v318_v41 = vmul.f32 0.2, %v242_v38  ;;  %v336_v53 = vsel %vm304_vm3, %v250_v40, %v320_v48  ;;  %v263_v60 = vadd.f32 %v1721_v39, %v2206_v32  ;;  %v1858_v48 = vld [vmem:[#allocation8 + $0x10] sm:$0xff]  }
  0xfa   :  { %v254_v42 = vpop.f32.mrf.mxu0  ;;  %v350_v56 = vpack.c.bf16 %v336_v53, %v335_v55  ;;  %v358_v53 = vlaneseq }
  0xfb   :  { %v334_v45 = vsel %vm302_vm2, %v242_v38, %v318_v41  ;;  %v255_v51 = vadd.f32 %v2206_v32, %v254_v42  ;;  %v323_v2 = vmul.f32 0.2, %v263_v60  ;;  %vm307_vm7 = vcmp.gt.f32.partialorder %v263_v60, 0.0  ;;  %v1851_v42 = vld [vmem:[#allocation8 + $0x68] sm:$0xff]  }
  0xfc   :  { %v1722_v46 = vpop.f32.mrf.mxu0  ;;  %v349_v47 = vpack.c.bf16 %v334_v45, %v333_v44  ;;  %1553 = vmatprep.subr.bf16.mxu0 %v1851_v42  ;;  %v1853_v44 = vld [vmem:[#allocation8 + $0x60] sm:$0xff]   ;;  %v1855_v45 = vld [vmem:[#allocation8 + $0x58] sm:$0xff]  }
  0xfd   :  { %v321_v57 = vmul.f32 0.2, %v255_v51  ;;  %vm305_vm5 = vcmp.gt.f32.partialorder %v255_v51, 0.0  ;;  %v266_v61 = vadd.f32 %v1722_v46, %v2206_v32  ;;  %v339_v7 = vsel %vm307_vm7, %v263_v60, %v323_v2  ;;  %1554 = vmatpush3.bf16.msra.mxu0 %v1852_v43  ;;  %v1856_v46 = vld [vmem:[#allocation8 + $0x18] sm:$0xff]  }
  0xfe   :  { %v257_v49 = vpop.f32.mrf.mxu0  ;;  %481 = vmatmul.mubr.bf16.vlgmr.msra.gmra.mxu1 %v349_v47  ;;  %1555 = vmatprep.subr.bf16.mxu0 %v1853_v44  ;;  %v1857_v47 = vld [vmem:[#allocation8 + $0x50] sm:$0xff]  }
  0xff   :  { %490 = vmatprep.mubr.bf16.mxu1 %v2090_v26  ;;  %v258_v52 = vadd.f32 %v2206_v32, %v257_v49  ;;  %v337_v62 = vsel %vm305_vm5, %v255_v51, %v321_v57  ;;  %v324_v3 = vmul.f32 0.2, %v266_v61  ;;  %vm308_vm8 = vcmp.gt.f32.partialorder %v266_v61, 0.0  ;;  %v1860_v49 = vld [vmem:[#allocation8 + $0x8] sm:$0xff]   ;;  %v1862_v51 = vld [vmem:[#allocation8] sm:$0xff]  }
 0x100   :  { %v1725_v54 = vpop.f32.mrf.mxu0 }
 0x101   :  { %v322_v58 = vmul.f32 0.2, %v258_v52  ;;  %vm306_vm6 = vcmp.gt.f32.partialorder %v258_v52, 0.0  ;;  %v340_v8 = vsel %vm308_vm8, %v266_v61, %v324_v3  ;;  %v279_v14 = vadd.f32 %v1725_v54, %v2206_v32 }
 0x102   :  { %v270_v59 = vpop.f32.mrf.mxu0  ;;  %v352_v10 = vpack.c.bf16 %v340_v8, %v339_v7  ;;  %v359_v54 = vshrl.u32 %v358_v53, 7 }
 0x103   :  { %v338_v63 = vsel %vm306_vm6, %v258_v52, %v322_v58  ;;  %v271_v5 = vadd.f32 %v2206_v32, %v270_v59  ;;  %v327_v20 = vmul.f32 0.2, %v279_v14  ;;  %vm311_vm11 = vcmp.gt.f32.partialorder %v279_v14, 0.0  ;;  %v1863_v52 = vld [vmem:[#allocation8 + $0x78] sm:$0xff]  }
 0x104   :  { %v1726_v0 = vpop.f32.mrf.mxu0  ;;  %v351_v1 = vpack.c.bf16 %v338_v63, %v337_v62  ;;  %v364_v55 = vsub.s32 1, %v359_v54  ;;  %v360_v57 = vsub.s32 0, %v359_v54 }
 0x105   :  { %v325_v11 = vmul.f32 0.2, %v271_v5  ;;  %vm309_vm9 = vcmp.gt.f32.partialorder %v271_v5, 0.0  ;;  %v282_v15 = vadd.f32 %v1726_v0, %v2206_v32  ;;  %v343_v25 = vsel %vm311_vm11, %v279_v14, %v327_v20 }
 0x106   :  { %491 = vmatmul.mubr.bf16.gmra.mxu1 %v350_v56  ;;  %v273_v4 = vpop.f32.mrf.mxu0  ;;  %v120_v56 = vld [vmem:[%s2435_s5] sm:$0x3] }
 0x107   :  { %500 = vmatprep.mubr.bf16.mxu1 %v2090_v26  ;;  %v274_v6 = vadd.f32 %v2206_v32, %v273_v4  ;;  %v341_v16 = vsel %vm309_vm9, %v271_v5, %v325_v11  ;;  %v328_v21 = vmul.f32 0.2, %v282_v15  ;;  %vm312_vm12 = vcmp.gt.f32.partialorder %v282_v15, 0.0 }
 0x108   :  { %v1729_v9 = vpop.f32.mrf.mxu0  ;;  %v2234_v58 = vrot.slane %v120_v56, %v364_v55  ;;  %v2236_v60 = vrot.slane %v120_v56, %v360_v57 }
 0x109   :  { %v326_v12 = vmul.f32 0.2, %v274_v6  ;;  %vm310_vm10 = vcmp.gt.f32.partialorder %v274_v6, 0.0  ;;  %v344_v27 = vsel %vm312_vm12, %v282_v15, %v328_v21  ;;  %v295_v31 = vadd.f32 %v1729_v9, %v2206_v32 }
 0x10a   :  { %v286_v13 = vpop.f32.mrf.mxu0  ;;  %v354_v28 = vpack.c.bf16 %v344_v27, %v343_v25  ;;  %v1864_v25 = vld [vmem:[#allocation8 + $0x38] sm:$0xff]  }
 0x10b   :  { %v342_v17 = vsel %vm310_vm10, %v274_v6, %v326_v12  ;;  %v287_v23 = vadd.f32 %v2206_v32, %v286_v13  ;;  %v331_v37 = vmul.f32 0.2, %v295_v31  ;;  %vm315_vm15 = vcmp.gt.f32.partialorder %v295_v31, 0.0 }
 0x10c   :  { %v1730_v18 = vpop.f32.mrf.mxu0  ;;  %v353_v19 = vpack.c.bf16 %v342_v17, %v341_v16 }
 0x10d   :  { %v329_v29 = vmul.f32 0.2, %v287_v23  ;;  %vm313_vm13 = vcmp.gt.f32.partialorder %v287_v23, 0.0  ;;  %v298_v33 = vadd.f32 %v1730_v18, %v2206_v32  ;;  %v347_v39 = vsel %vm315_vm15, %v295_v31, %v331_v37 }
 0x10e   :  { %501 = vmatmul.mubr.bf16.gmra.mxu1 %v351_v1  ;;  %v289_v22 = vpop.f32.mrf.mxu0 }
 0x10f   :  { %510 = vmatprep.mubr.bf16.mxu1 %v2090_v26  ;;  %v290_v24 = vadd.f32 %v2206_v32, %v289_v22  ;;  %v345_v34 = vsel %vm313_vm13, %v287_v23, %v329_v29  ;;  %v332_v38 = vmul.f32 0.2, %v298_v33  ;;  %vm316_vm0 = vcmp.gt.f32.partialorder %v298_v33, 0.0  ;;  %v1854_v32 = vld [vmem:[#allocation8 + $0x20] sm:$0xff]   ;;  %v1865_v29 = vld [vmem:[#allocation8 + $0x70] sm:$0xff]  }
 0x110   :  { %1556 = vmatpush3.bf16.msra.mxu0 %v1854_v32  ;;  %v1868_v32 = vld [vmem:[#allocation8 + $0x28] sm:$0xff]  }
 0x111   :  { %v330_v30 = vmul.f32 0.2, %v290_v24  ;;  %vm314_vm14 = vcmp.gt.f32.partialorder %v290_v24, 0.0  ;;  %v348_v40 = vsel %vm316_vm0, %v298_v33, %v332_v38  ;;  %1557 = vmatprep.subr.bf16.mxu0 %v1855_v45  ;;  %v1866_v33 = vld [vmem:[#allocation8 + $0x30] sm:$0xff]  }
 0x112   :  { %v356_v41 = vpack.c.bf16 %v348_v40, %v347_v39 }
 0x113   :  { %v346_v35 = vsel %vm314_vm14, %v290_v24, %v330_v30 }
 0x114   :  { %v355_v36 = vpack.c.bf16 %v346_v35, %v345_v34  ;;  %1558 = vmatpush3.bf16.msra.mxu0 %v1856_v46 }
 0x115   :  { %1559 = vmatprep.subr.bf16.mxu0 %v1857_v47  ;;  %v1869_v47 = vld [vmem:[#allocation8 + $0x60] sm:$0xff]  }
 0x116   :  { %511 = vmatmul.mubr.bf16.gmra.mxu1 %v352_v10 }
 0x117   :  { %520 = vmatprep.mubr.bf16.mxu1 %v2090_v26 }
 0x118   :  { %1560 = vmatpush3.bf16.msra.mxu0 %v1858_v48 }
 0x11e   :  { %521 = vmatmul.mubr.bf16.gmra.mxu1 %v353_v19 }
 0x11f   :  { %530 = vmatprep.mubr.bf16.mxu1 %v2090_v26 }
 0x126   :  { %531 = vmatmul.mubr.bf16.gmra.mxu1 %v354_v28 }
 0x127   :  { %540 = vmatprep.mubr.bf16.mxu1 %v2090_v26 }
 0x12e   :  { %541 = vmatmul.mubr.bf16.gmra.mxu1 %v355_v36  ;;  %v1867_v36 = vld [vmem:[#allocation8 + $0x68] sm:$0xff]  }
 0x12f   :  { %550 = vmatprep.mubr.bf16.mxu1 %v2090_v26  ;;  %v1859_v26 = vld [vmem:[#allocation8 + $0x48] sm:$0xff]  }
 0x130   :  { %1561 = vmatprep.subr.bf16.mxu0 %v1859_v26 }
 0x131   :  { %1562 = vmatpush3.bf16.msra.mxu0 %v1860_v49  ;;  %v1870_v49 = vld [vmem:[#allocation8 + $0x20] sm:$0xff]  }
 0x132   :  { %1563 = vmatprep.subr.bf16.mxu0 %v1861_v50 }
 0x135   :  { %1564 = vmatpush3.bf16.msra.mxu0 %v1862_v51 }
 0x136   :  { %551 = vmatmul.mubr.bf16.gmra.mxu1 %v356_v41  ;;  %1630 = vmatprep.subr.bf16.mxu0 %v1863_v52  ;;  %v1871_v52 = vld [vmem:[#allocation8 + $0x58] sm:$0xff]  }
 0x1be   :  { %v482_v59 = vpop.f32.mrf.mxu1 }
 0x1bf   :  { %v483_v1 = vadd.f32 %v482_v59, %v2236_v60 }
 0x1c0   :  { %v484_v61 = vpop.f32.mrf.mxu1 }
 0x1c1   :  { %v485_v62 = vadd.f32 %v484_v61, %v2234_v58 }
 0x1c2   :  { %v486_v63 = vpop.f32.mrf.mxu1 }
 0x1c3   :  { %v487_v0 = vadd.f32 %v486_v63, %v2236_v60  ;;  %1903 = vtanh.f32 %v485_v62  ;;  %v1872_v63 = vld [vmem:[#allocation8 + $0x18] sm:$0xff]  }
 0x1c4   :  { %v488_v2 = vpop.f32.mrf.mxu1 }
 0x1c5   :  { %v489_v3 = vadd.f32 %v488_v2, %v2234_v58  ;;  %1905 = vtanh.f32 %v487_v0  ;;  %v1873_v2 = vld [vmem:[#allocation8 + $0x50] sm:$0xff]  }
 0x1c6   :  { %v492_v4 = vpop.f32.mrf.mxu1 }
 0x1c7   :  { %1907 = vtanh.f32 %v489_v3  ;;  %v493_v9 = vadd.f32 %v492_v4, %v2236_v60 }
 0x1c8   :  { %1909 = vtanh.f32 %v483_v1  ;;  %v494_v5 = vpop.f32.mrf.mxu1 }
 0x1c9   :  { %v495_v6 = vadd.f32 %v494_v5, %v2234_v58  ;;  %v1874_v5 = vld [vmem:[#allocation8 + $0x10] sm:$0xff]  }
 0x1ca   :  { %v496_v7 = vpop.f32.mrf.mxu1 }
 0x1cb   :  { %v497_v8 = vadd.f32 %v496_v7, %v2236_v60  ;;  %1911 = vtanh.f32 %v495_v6 }
 0x1cc   :  { %v498_v10 = vpop.f32.mrf.mxu1 }
 0x1cd   :  { %v499_v11 = vadd.f32 %v498_v10, %v2234_v58  ;;  %1913 = vtanh.f32 %v497_v8  ;;  %v1875_v8 = vld [vmem:[#allocation8 + $0x48] sm:$0xff]  }
 0x1ce   :  { %v502_v12 = vpop.f32.mrf.mxu1 }
 0x1cf   :  { %1915 = vtanh.f32 %v499_v11  ;;  %v503_v20 = vadd.f32 %v502_v12, %v2236_v60 }
 0x1d0   :  { %1917 = vtanh.f32 %v493_v9  ;;  %v504_v13 = vpop.f32.mrf.mxu1  ;;  %v1904_v15 = vpop.eup %1903 }
 0x1d1   :  { %v505_v14 = vadd.f32 %v504_v13, %v2234_v58 }
 0x1d2   :  { %v506_v16 = vpop.f32.mrf.mxu1  ;;  %v1906_v17 = vpop.eup %1905 }
 0x1d3   :  { %v507_v18 = vadd.f32 %v506_v16, %v2236_v60  ;;  %1919 = vtanh.f32 %v505_v14 }
 0x1d4   :  { %v1908_v19 = vpop.eup %1907  ;;  %v508_v21 = vpop.f32.mrf.mxu1 }
 0x1d5   :  { %v1910_v22 = vpop.eup %1909  ;;  %v509_v23 = vadd.f32 %v508_v21, %v2234_v58  ;;  %v594_v24 = vpack.c.bf16 %v1908_v19, %v1904_v15  ;;  %1921 = vtanh.f32 %v507_v18 }
 0x1d6   :  { %v512_v27 = vpop.f32.mrf.mxu1  ;;  %v593_v28 = vpack.c.bf16 %v1906_v17, %v1910_v22  ;;  %v1876_v17 = vld [vmem:[#allocation8 + $0x8] sm:$0xff]  }
 0x1d7   :  { %1923 = vtanh.f32 %v509_v23  ;;  %776 = vmatprep.mubr.bf16.mxu0 %v594_v24  ;;  %v513_v40 = vadd.f32 %v512_v27, %v2236_v60  ;;  %v1878_v23 = vld [vmem:[#allocation8] sm:$0xff]  }
 0x1d8   :  { %1925 = vtanh.f32 %v503_v20  ;;  %v514_v30 = vpop.f32.mrf.mxu1  ;;  %777 = vmatmul.mubr.bf16.vlgmr.msra.gmra.mxu0 %v593_v28  ;;  %v1912_v34 = vpop.eup %1911  ;;  %v1877_v20 = vld [vmem:[#allocation8 + $0x40] sm:$0xff]  }
 0x1d9   :  { %v515_v31 = vadd.f32 %v514_v30, %v2234_v58  ;;  %1631 = vmatpush3.bf16.msra.mxu0 %v1864_v25 }
 0x1da   :  { %v516_v35 = vpop.f32.mrf.mxu1  ;;  %1632 = vmatprep.subr.bf16.mxu0 %v1865_v29  ;;  %v1914_v37 = vpop.eup %1913 }
 0x1db   :  { %v517_v38 = vadd.f32 %v516_v35, %v2236_v60  ;;  %1927 = vtanh.f32 %v515_v31 }
 0x1dc   :  { %v1916_v39 = vpop.eup %1915  ;;  %v518_v41 = vpop.f32.mrf.mxu1 }
 0x1dd   :  { %v1918_v42 = vpop.eup %1917  ;;  %v519_v43 = vadd.f32 %v518_v41, %v2234_v58  ;;  %v596_v44 = vpack.c.bf16 %v1916_v39, %v1912_v34  ;;  %1633 = vmatpush3.bf16.msra.mxu0 %v1866_v33  ;;  %1929 = vtanh.f32 %v517_v38 }
 0x1de   :  { %v522_v45 = vpop.f32.mrf.mxu1  ;;  %v595_v46 = vpack.c.bf16 %v1914_v37, %v1918_v42  ;;  %1634 = vmatprep.subr.bf16.mxu0 %v1867_v36 }
 0x1df   :  { %1931 = vtanh.f32 %v519_v43  ;;  %784 = vmatprep.mubr.bf16.mxu0 %v596_v44  ;;  %v523_v56 = vadd.f32 %v522_v45, %v2236_v60 }
 0x1e0   :  { %1933 = vtanh.f32 %v513_v40  ;;  %v524_v48 = vpop.f32.mrf.mxu1  ;;  %785 = vmatmul.mubr.bf16.gmra.mxu0 %v595_v46  ;;  %v1920_v50 = vpop.eup %1919 }
 0x1e1   :  { %v525_v26 = vadd.f32 %v524_v48, %v2234_v58  ;;  %1635 = vmatpush3.bf16.msra.mxu0 %v1868_v32 }
 0x1e2   :  { %v526_v51 = vpop.f32.mrf.mxu1  ;;  %1636 = vmatprep.subr.bf16.mxu0 %v1869_v47  ;;  %v1922_v53 = vpop.eup %1921 }
 0x1e3   :  { %v527_v54 = vadd.f32 %v526_v51, %v2236_v60  ;;  %1935 = vtanh.f32 %v525_v26 }
 0x1e4   :  { %v1924_v55 = vpop.eup %1923  ;;  %v528_v57 = vpop.f32.mrf.mxu1 }
 0x1e5   :  { %v1926_v59 = vpop.eup %1925  ;;  %v529_v61 = vadd.f32 %v528_v57, %v2234_v58  ;;  %v598_v62 = vpack.c.bf16 %v1924_v55, %v1920_v50  ;;  %1637 = vmatpush3.bf16.msra.mxu0 %v1870_v49  ;;  %1937 = vtanh.f32 %v527_v54 }
 0x1e6   :  { %v532_v0 = vpop.f32.mrf.mxu1  ;;  %v597_v1 = vpack.c.bf16 %v1922_v53, %v1926_v59  ;;  %1638 = vmatprep.subr.bf16.mxu0 %v1871_v52  ;;  %v1881_v59 = vld [vmem:[#allocation3 + $0x4] ss:$8 sps:$4 sm:$0xff]  }
 0x1e7   :  { %1939 = vtanh.f32 %v529_v61  ;;  %792 = vmatprep.mubr.bf16.mxu0 %v598_v62  ;;  %v533_v12 = vadd.f32 %v532_v0, %v2236_v60  ;;  %v1879_v62 = vld [vmem:[#allocation3] ss:$8 sps:$4 sm:$0xff]   ;;  %v1884_v0 = vld [vmem:[#allocation3 + $0x10] ss:$8 sps:$4 sm:$0xff]  }
 0x1e8   :  { %1941 = vtanh.f32 %v523_v56  ;;  %v534_v3 = vpop.f32.mrf.mxu1  ;;  %793 = vmatmul.mubr.bf16.gmra.mxu0 %v597_v1  ;;  %v1928_v6 = vpop.eup %1927  ;;  %v1885_v1 = vld [vmem:[#allocation3 + $0x24] ss:$8 sps:$4 sm:$0xff]  }
 0x1e9   :  { %v535_v4 = vadd.f32 %v534_v3, %v2234_v58  ;;  %1639 = vmatpush3.bf16.msra.mxu0 %v1872_v63  ;;  %v1882_v63 = vld [vmem:[#allocation3 + $0x14] ss:$8 sps:$4 sm:$0xff]  }
 0x1ea   :  { %v536_v7 = vpop.f32.mrf.mxu1  ;;  %1640 = vmatprep.subr.bf16.mxu0 %v1873_v2  ;;  %v1930_v9 = vpop.eup %1929  ;;  %v1887_v2 = vld [vmem:[#allocation3 + $0x20] ss:$8 sps:$4 sm:$0xff]   ;;  %v1888_v3 = vld [vmem:[#allocation3 + $0x34] ss:$8 sps:$4 sm:$0xff]  }
 0x1eb   :  { %v537_v10 = vadd.f32 %v536_v7, %v2236_v60  ;;  %1943 = vtanh.f32 %v535_v4  ;;  %v1890_v4 = vld [vmem:[#allocation3 + $0x30] ss:$8 sps:$4 sm:$0xff]   ;;  %v1894_v7 = vld [vmem:[#allocation3 + $0x54] ss:$8 sps:$4 sm:$0xff]  }
 0x1ec   :  { %v1932_v11 = vpop.eup %1931  ;;  %v538_v13 = vpop.f32.mrf.mxu1 }
 0x1ed   :  { %v1934_v14 = vpop.eup %1933  ;;  %v539_v15 = vadd.f32 %v538_v13, %v2234_v58  ;;  %v600_v16 = vpack.c.bf16 %v1932_v11, %v1928_v6  ;;  %1641 = vmatpush3.bf16.msra.mxu0 %v1874_v5  ;;  %1945 = vtanh.f32 %v537_v10  ;;  %v1891_v5 = vld [vmem:[#allocation3 + $0x44] ss:$8 sps:$4 sm:$0xff]   ;;  %v1893_v6 = vld [vmem:[#allocation3 + $0x40] ss:$8 sps:$4 sm:$0xff]   ;;  %v1900_v11 = vld [vmem:[#allocation3 + $0x74] ss:$8 sps:$4 sm:$0xff]  }
 0x1ee   :  { %v542_v18 = vpop.f32.mrf.mxu1  ;;  %v599_v19 = vpack.c.bf16 %v1930_v9, %v1934_v14  ;;  %1642 = vmatprep.subr.bf16.mxu0 %v1875_v8  ;;  %v1896_v8 = vld [vmem:[#allocation3 + $0x50] ss:$8 sps:$4 sm:$0xff]   ;;  %v1897_v9 = vld [vmem:[#allocation3 + $0x64] ss:$8 sps:$4 sm:$0xff]   ;;  %v1899_v10 = vld [vmem:[#allocation3 + $0x60] ss:$8 sps:$4 sm:$0xff]  }
 0x1ef   :  { %1947 = vtanh.f32 %v539_v15  ;;  %800 = vmatprep.mubr.bf16.mxu0 %v600_v16  ;;  %v543_v30 = vadd.f32 %v542_v18, %v2236_v60  ;;  %v2091_v13 = vmov 0.0  }
 0x1f0   :  { %1949 = vtanh.f32 %v533_v12  ;;  %v544_v21 = vpop.f32.mrf.mxu1  ;;  %801 = vmatmul.mubr.bf16.gmra.mxu0 %v599_v19  ;;  %v1936_v24 = vpop.eup %1935  ;;  %v1902_v12 = vld [vmem:[#allocation3 + $0x70] ss:$8 sps:$4 sm:$0xff]   ;;  %1731 = vmatprep.subr.mxu1 %v2091_v13 }
 0x1f1   :  { %v545_v22 = vadd.f32 %v544_v21, %v2234_v58  ;;  %1643 = vmatpush3.bf16.msra.mxu0 %v1876_v17  ;;  %1763 = vmatprep.mubr.msk.f32.mxu1 %vm2092_vm1, %v2091_v13 }
 0x1f2   :  { %v546_v25 = vpop.f32.mrf.mxu1  ;;  %1644 = vmatprep.subr.bf16.mxu0 %v1877_v20  ;;  %v1938_v27 = vpop.eup %1937 }
 0x1f3   :  { %v547_v28 = vadd.f32 %v546_v25, %v2236_v60  ;;  %1951 = vtanh.f32 %v545_v22 }
 0x1f4   :  { %v1940_v29 = vpop.eup %1939  ;;  %v548_v31 = vpop.f32.mrf.mxu1 }
 0x1f5   :  { %v1942_v33 = vpop.eup %1941  ;;  %v549_v34 = vadd.f32 %v548_v31, %v2234_v58  ;;  %v602_v35 = vpack.c.bf16 %v1940_v29, %v1936_v24  ;;  %1645 = vmatpush3.bf16.msra.mxu0 %v1878_v23  ;;  %1953 = vtanh.f32 %v547_v28 }
 0x1f6   :  { %v552_v36 = vpop.f32.mrf.mxu1  ;;  %v601_v37 = vpack.c.bf16 %v1938_v27, %v1942_v33 }
 0x1f7   :  { %1955 = vtanh.f32 %v549_v34  ;;  %808 = vmatprep.mubr.bf16.mxu0 %v602_v35  ;;  %v553_v32 = vadd.f32 %v552_v36, %v2236_v60 }
 0x1f8   :  { %1957 = vtanh.f32 %v543_v30  ;;  %v554_v38 = vpop.f32.mrf.mxu1  ;;  %809 = vmatmul.mubr.bf16.gmra.mxu0 %v601_v37  ;;  %v1944_v40 = vpop.eup %1943 }
 0x1f9   :  { %v555_v39 = vadd.f32 %v554_v38, %v2234_v58 }
 0x1fa   :  { %v556_v41 = vpop.f32.mrf.mxu1  ;;  %v1946_v42 = vpop.eup %1945 }
 0x1fb   :  { %v557_v43 = vadd.f32 %v556_v41, %v2236_v60  ;;  %1959 = vtanh.f32 %v555_v39 }
 0x1fc   :  { %v1948_v44 = vpop.eup %1947  ;;  %v558_v45 = vpop.f32.mrf.mxu1 }
 0x1fd   :  { %v1950_v46 = vpop.eup %1949  ;;  %v559_v47 = vadd.f32 %v558_v45, %v2234_v58  ;;  %v604_v48 = vpack.c.bf16 %v1948_v44, %v1944_v40  ;;  %1961 = vtanh.f32 %v557_v43 }
 0x1fe   :  { %v603_v26 = vpack.c.bf16 %v1946_v42, %v1950_v46 }
 0x1ff   :  { %1963 = vtanh.f32 %v559_v47  ;;  %816 = vmatprep.mubr.bf16.mxu0 %v604_v48 }
 0x200   :  { %1965 = vtanh.f32 %v553_v32  ;;  %817 = vmatmul.mubr.bf16.gmra.mxu0 %v603_v26  ;;  %v1952_v49 = vpop.eup %1951 }
 0x202   :  { %v1954_v50 = vpop.eup %1953 }
 0x204   :  { %v1956_v51 = vpop.eup %1955 }
 0x205   :  { %v1958_v52 = vpop.eup %1957  ;;  %v606_v53 = vpack.c.bf16 %v1956_v51, %v1952_v49 }
 0x206   :  { %v605_v54 = vpack.c.bf16 %v1954_v50, %v1958_v52 }
 0x207   :  { %824 = vmatprep.mubr.bf16.mxu0 %v606_v53 }
 0x208   :  { %825 = vmatmul.mubr.bf16.gmra.mxu0 %v605_v54  ;;  %v1960_v60 = vpop.eup %1959 }
 0x20a   :  { %v1962_v55 = vpop.eup %1961 }
 0x20c   :  { %v1964_v56 = vpop.eup %1963 }
 0x20d   :  { %v1966_v57 = vpop.eup %1965  ;;  %v608_v58 = vpack.c.bf16 %v1964_v56, %v1960_v60 }
 0x20e   :  { %v607_v61 = vpack.c.bf16 %v1962_v55, %v1966_v57  ;;  %v2296_v55 = vld [vmem:[%s2437_s7] ss:$0 sm:$0xff] }
 0x20f   :  { %832 = vmatprep.mubr.bf16.mxu0 %v608_v58 }
 0x210   :  { %833 = vmatmul.mubr.bf16.gmra.mxu0 %v607_v61 }
 0x211   :  { %1231 = vmatprep.mubr.bf16.mxu0 %v1881_v59 }
 0x218   :  { %1232 = vmatmul.mubr.bf16.vlgmr.msra.gmra.mxu0 %v1879_v62 }
 0x219   :  { %1239 = vmatprep.mubr.bf16.mxu0 %v1882_v63 }
 0x220   :  { %1240 = vmatmul.mubr.bf16.gmra.mxu0 %v1884_v0 }
 0x221   :  { %1247 = vmatprep.mubr.bf16.mxu0 %v1885_v1 }
 0x228   :  { %1248 = vmatmul.mubr.bf16.gmra.mxu0 %v1887_v2 }
 0x229   :  { %1255 = vmatprep.mubr.bf16.mxu0 %v1888_v3 }
 0x230   :  { %1256 = vmatmul.mubr.bf16.gmra.mxu0 %v1890_v4 }
 0x231   :  { %1263 = vmatprep.mubr.bf16.mxu0 %v1891_v5 }
 0x238   :  { %1264 = vmatmul.mubr.bf16.gmra.mxu0 %v1893_v6 }
 0x239   :  { %1271 = vmatprep.mubr.bf16.mxu0 %v1894_v7 }
 0x240   :  { %1272 = vmatmul.mubr.bf16.gmra.mxu0 %v1896_v8 }
 0x241   :  { %1279 = vmatprep.mubr.bf16.mxu0 %v1897_v9 }
 0x248   :  { %1280 = vmatmul.mubr.bf16.gmra.mxu0 %v1899_v10 }
 0x249   :  { %1287 = vmatprep.mubr.bf16.mxu0 %v1900_v11 }
 0x250   :  { %1288 = vmatmul.mubr.bf16.gmra.mxu0 %v1902_v12 }
 0x298   :  { %v1565_v14 = vpop.f32.mrf.mxu0 }
 0x29a   :  { %v1566_v15 = vpop.f32.mrf.mxu0 }
 0x29b   :  { %v2271_v16 = vadd.f32 %v1566_v15, %v1565_v14 }
 0x29c   :  { %v1568_v17 = vpop.f32.mrf.mxu0 }
 0x29e   :  { %v1569_v18 = vpop.f32.mrf.mxu0 }
 0x29f   :  { %v2275_v19 = vadd.f32 %v1569_v18, %v1568_v17 }
 0x2a0   :  { %v1571_v20 = vpop.f32.mrf.mxu0 }
 0x2a2   :  { %v1572_v21 = vpop.f32.mrf.mxu0 }
 0x2a3   :  { %v2277_v22 = vadd.f32 %v1572_v21, %v1571_v20 }
 0x2a4   :  { %v1574_v23 = vpop.f32.mrf.mxu0 }
 0x2a6   :  { %v1575_v24 = vpop.f32.mrf.mxu0 }
 0x2a7   :  { %v2279_v25 = vadd.f32 %v1575_v24, %v1574_v23 }
 0x2a8   :  { %v1577_v27 = vpop.f32.mrf.mxu0 }
 0x2aa   :  { %v1578_v28 = vpop.f32.mrf.mxu0 }
 0x2ab   :  { %v2281_v29 = vadd.f32 %v1578_v28, %v1577_v27 }
 0x2ac   :  { %v1580_v30 = vpop.f32.mrf.mxu0 }
 0x2ae   :  { %v1581_v31 = vpop.f32.mrf.mxu0 }
 0x2af   :  { %v2283_v33 = vadd.f32 %v1581_v31, %v1580_v30 }
 0x2b0   :  { %v1583_v34 = vpop.f32.mrf.mxu0 }
 0x2b2   :  { %v1584_v35 = vpop.f32.mrf.mxu0 }
 0x2b3   :  { %v2285_v36 = vadd.f32 %v1584_v35, %v1583_v34 }
 0x2b4   :  { %v1586_v37 = vpop.f32.mrf.mxu0 }
 0x2b6   :  { %v1587_v38 = vpop.f32.mrf.mxu0 }
 0x2b7   :  { %v2287_v39 = vadd.f32 %v1587_v38, %v1586_v37 }
 0x2b8   :  { %v2289_v40 = vpop.f32.mrf.mxu0 }
 0x2ba   :  { %v2291_v41 = vpop.f32.mrf.mxu0 }
 0x2bc   :  { %v1592_v42 = vpop.f32.mrf.mxu0 }
 0x2be   :  { %v1593_v43 = vpop.f32.mrf.mxu0 }
 0x2bf   :  { %v1594_v28 = vadd.f32 %v1593_v43, %v1592_v42 }
 0x2c0   :  { %v1595_v44 = vpop.f32.mrf.mxu0 }
 0x2c2   :  { %v1596_v32 = vpop.f32.mrf.mxu0 }
 0x2c3   :  { %v1597_v17 = vadd.f32 %v1596_v32, %v1595_v44  ;;  %v1591_v44 = vadd.f32 %v2291_v41, %v2289_v40  ;;  %v814_v32 = vadd.f32 %v1594_v28, %v2296_v55 }
 0x2c4   :  { %v1598_v45 = vpop.f32.mrf.mxu0 }
 0x2c5   :  { %v819_v30 = vadd.f32 %v1597_v17, %v2296_v55  ;;  %vm850_vm8 = vcmp.gt.f32.partialorder %v814_v32, 0.0 }
 0x2c6   :  { %v1599_v46 = vpop.f32.mrf.mxu0 }
 0x2c7   :  { %v1600_v8 = vadd.f32 %v1599_v46, %v1598_v45  ;;  %v867_v45 = vmul.f32 0.2, %v819_v30  ;;  %vm851_vm7 = vcmp.gt.f32.partialorder %v819_v30, 0.0 }
 0x2c8   :  { %v1601_v47 = vpop.f32.mrf.mxu0 }
 0x2c9   :  { %v822_v18 = vadd.f32 %v1600_v8, %v2296_v55  ;;  %v790_v8 = vadd.f32 %v2279_v25, %v2296_v55  ;;  %v782_v25 = vadd.f32 %v2275_v19, %v2296_v55 }
 0x2ca   :  { %v1602_v48 = vpop.f32.mrf.mxu0 }
 0x2cb   :  { %v1603_v1 = vadd.f32 %v1602_v48, %v1601_v47  ;;  %v868_v31 = vmul.f32 0.2, %v822_v18  ;;  %vm852_vm6 = vcmp.gt.f32.partialorder %v822_v18, 0.0  ;;  %v811_v48 = vadd.f32 %v1591_v44, %v2296_v55 }
 0x2cc   :  { %v1604_v26 = vpop.f32.mrf.mxu0  ;;  %vm844_vm14 = vcmp.gt.f32.partialorder %v790_v8, 0.0  ;;  %vm842_vm0 = vcmp.gt.f32.partialorder %v782_v25, 0.0 }
 0x2cd   :  { %v827_v9 = vadd.f32 %v1603_v1, %v2296_v55  ;;  %v884_v46 = vsel %vm852_vm6, %v822_v18, %v868_v31  ;;  %vm849_vm9 = vcmp.gt.f32.partialorder %v811_v48, 0.0 }
 0x2ce   :  { %v1605_v49 = vpop.f32.mrf.mxu0 }
 0x2cf   :  { %v1606_v57 = vadd.f32 %v1605_v49, %v1604_v26  ;;  %v869_v20 = vmul.f32 0.2, %v827_v9  ;;  %vm853_vm5 = vcmp.gt.f32.partialorder %v827_v9, 0.0  ;;  %v866_v26 = vmul.f32 0.2, %v814_v32 }
 0x2d0   :  { %v1607_v50 = vpop.f32.mrf.mxu0  ;;  %v883_v49 = vsel %vm851_vm7, %v819_v30, %v867_v45  ;;  %v858_v30 = vmul.f32 0.2, %v782_v25 }
 0x2d1   :  { %v830_v2 = vadd.f32 %v1606_v57, %v2296_v55  ;;  %v885_v34 = vsel %vm853_vm5, %v827_v9, %v869_v20  ;;  %v803_v57 = vadd.f32 %v2285_v36, %v2296_v55 }
 0x2d2   :  { %v1608_v51 = vpop.f32.mrf.mxu0  ;;  %v874_v44 = vsel %vm842_vm0, %v782_v25, %v858_v30 }
 0x2d3   :  { %v1609_v53 = vadd.f32 %v1608_v51, %v1607_v50  ;;  %v870_v10 = vmul.f32 0.2, %v830_v2  ;;  %vm854_vm4 = vcmp.gt.f32.partialorder %v830_v2, 0.0  ;;  %v806_v51 = vadd.f32 %v2287_v39, %v2296_v55 }
 0x2d4   :  { %v1610_v52 = vpop.f32.mrf.mxu0  ;;  %vm847_vm11 = vcmp.gt.f32.partialorder %v803_v57, 0.0 }
 0x2d5   :  { %v835_v58 = vadd.f32 %v1609_v53, %v2296_v55  ;;  %v886_v21 = vsel %vm854_vm4, %v830_v2, %v870_v10  ;;  %v882_v53 = vsel %vm850_vm8, %v814_v32, %v866_v26  ;;  %vm848_vm10 = vcmp.gt.f32.partialorder %v806_v51, 0.0 }
 0x2d6   :  { %v1611_v54 = vpop.f32.mrf.mxu0 }
 0x2d7   :  { %v1612_v60 = vadd.f32 %v1611_v54, %v1610_v52  ;;  %v871_v3 = vmul.f32 0.2, %v835_v58  ;;  %vm855_vm3 = vcmp.gt.f32.partialorder %v835_v58, 0.0  ;;  %v865_v52 = vmul.f32 0.2, %v811_v48 }
 0x2d8   :  { %v1646_v56 = vpop.f32.mrf.mxu0 }
 0x2d9   :  { %v838_v59 = vadd.f32 %v1612_v60, %v2296_v55  ;;  %v887_v11 = vsel %vm855_vm3, %v835_v58, %v871_v3  ;;  %v864_v58 = vmul.f32 0.2, %v806_v51  ;;  %v795_v3 = vadd.f32 %v2281_v29, %v2296_v55 }
 0x2da   :  { %v1647_v61 = vpop.f32.mrf.mxu0 }
 0x2db   :  { %v872_v62 = vmul.f32 0.2, %v838_v59  ;;  %v2300_v63 = vadd.f32 %v1647_v61, %v1646_v56  ;;  %vm856_vm2 = vcmp.gt.f32.partialorder %v838_v59, 0.0  ;;  %v880_v1 = vsel %vm848_vm10, %v806_v51, %v864_v58 }
 0x2dc   :  { %v1649_v0 = vpop.f32.mrf.mxu0  ;;  %v861_v9 = vmul.f32 0.2, %v795_v3  ;;  %vm845_vm13 = vcmp.gt.f32.partialorder %v795_v3, 0.0 }
 0x2dd   :  { %v888_v4 = vsel %vm856_vm2, %v838_v59, %v872_v62  ;;  %v881_v59 = vsel %vm849_vm9, %v811_v48, %v865_v52  ;;  %v798_v62 = vadd.f32 %v2283_v33, %v2296_v55  ;;  %v889_v48 = vld [vmem:[%s2438_s8] sm:$0x1]  ;;  %v1234_v30 = vadd.f32 %v2300_v63, %v2296_v55 }
 0x2de   :  { %1732 = vmatpush3.xpose.msra.mxu1 %v888_v4  ;;  %v1650_v5 = vpop.f32.mrf.mxu0  ;;  %v877_v17 = vsel %vm845_vm13, %v795_v3, %v861_v9 }
 0x2df   :  { %v2303_v6 = vadd.f32 %v1650_v5, %v1649_v0  ;;  %1733 = vmatprep.subr.mxu1 %v2091_v13  ;;  %v863_v0 = vmul.f32 0.2, %v803_v57  ;;  %v862_v4 = vmul.f32 0.2, %v798_v62  ;;  %vm846_vm12 = vcmp.gt.f32.partialorder %v798_v62, 0.0 }
 0x2e0   :  { %v1652_v7 = vpop.f32.mrf.mxu0 }
 0x2e1   :  { %v879_v5 = vsel %vm847_vm11, %v803_v57, %v863_v0  ;;  %v878_v10 = vsel %vm846_vm12, %v798_v62, %v862_v4 }
 0x2e2   :  { %1734 = vmatpush3.xpose.msra.mxu1 %v887_v11  ;;  %v1653_v12 = vpop.f32.mrf.mxu0 }
 0x2e3   :  { %v2307_v14 = vadd.f32 %v1653_v12, %v1652_v7  ;;  %1735 = vmatprep.subr.mxu1 %v2091_v13  ;;  %v787_v12 = vadd.f32 %v2277_v22, %v2296_v55  ;;  %v779_v22 = vadd.f32 %v2271_v16, %v2296_v55 }
 0x2e4   :  { %v1655_v15 = vpop.f32.mrf.mxu0 }
 0x2e5   :  { %vm843_vm15 = vcmp.gt.f32.partialorder %v787_v12, 0.0  ;;  %v857_v19 = vmul.f32 0.2, %v779_v22  ;;  %vm841_vm2 = vcmp.gt.f32.partialorder %v779_v22, 0.0 }
 0x2e6   :  { %1736 = vmatpush3.xpose.msra.mxu1 %v886_v21  ;;  %v1656_v23 = vpop.f32.mrf.mxu0  ;;  %v859_v21 = vmul.f32 0.2, %v787_v12 }
 0x2e7   :  { %v2311_v24 = vadd.f32 %v1656_v23, %v1655_v15  ;;  %1737 = vmatprep.subr.mxu1 %v2091_v13  ;;  %v860_v15 = vmul.f32 0.2, %v790_v8 }
 0x2e8   :  { %v1658_v27 = vpop.f32.mrf.mxu0  ;;  %v875_v31 = vsel %vm843_vm15, %v787_v12, %v859_v21 }
 0x2e9   :  { %v876_v23 = vsel %vm844_vm14, %v790_v8, %v860_v15  ;;  %v1245_v25 = vadd.f32 %v2311_v24, %v2296_v55 }
 0x2ea   :  { %1738 = vmatpush3.xpose.msra.mxu1 %v885_v34  ;;  %v1659_v35 = vpop.f32.mrf.mxu0 }
 0x2eb   :  { %v2315_v37 = vadd.f32 %v1659_v35, %v1658_v27  ;;  %1739 = vmatprep.subr.mxu1 %v2091_v13  ;;  %vm1299_vm14 = vcmp.gt.f32.partialorder %v1245_v25, 0.0 }
 0x2ec   :  { %v1661_v38 = vpop.f32.mrf.mxu0 }
 0x2ee   :  { %1740 = vmatpush3.xpose.msra.mxu1 %v884_v46  ;;  %v1662_v42 = vpop.f32.mrf.mxu0 }
 0x2ef   :  { %v2321_v43 = vadd.f32 %v1662_v42, %v1661_v38  ;;  %1741 = vmatprep.subr.mxu1 %v2091_v13 }
 0x2f0   :  { %v1664_v47 = vpop.f32.mrf.mxu0 }
 0x2f1   :  { %v1253_v15 = vadd.f32 %v2321_v43, %v2296_v55 }
 0x2f2   :  { %1742 = vmatpush3.xpose.msra.mxu1 %v883_v49  ;;  %v1665_v50 = vpop.f32.mrf.mxu0 }
 0x2f3   :  { %v2325_v40 = vadd.f32 %v1665_v50, %v1664_v47  ;;  %1743 = vmatprep.subr.mxu1 %v2091_v13  ;;  %v873_v47 = vsel %vm841_vm2, %v779_v22, %v857_v19  ;;  %vm1301_vm12 = vcmp.gt.f32.partialorder %v1253_v15, 0.0  ;;  %vm1296_vm2 = vcmp.gt.f32.partialorder %v1234_v30, 0.0  ;;  %v1344_v19 = vld [vmem:[%s2438_s8] sm:$0x1]  ;;  %s2039_s8 = scalar_lea.vmem %s1429_s6, 32 }
 0x2f4   :  { %v1667_v41 = vpop.f32.mrf.mxu0  ;;  %p2041_p3 = scmp.lt.s32.totalorder %s2039_s8, %s2035_s21 }
 0x2f6   :  { %1744 = vmatpush3.xpose.msra.mxu1 %v882_v53  ;;  %v1668_v54 = vpop.f32.mrf.mxu0  ;;  %p2042_p4 = por %p2041_p3, %p2040_p2 }
 0x2f7   :  { %v2330_v60 = vadd.f32 %v1668_v54, %v1667_v41  ;;  %1745 = vmatprep.subr.mxu1 %v2091_v13 }
 0x2f8   :  { %v2333_v56 = vpop.f32.mrf.mxu0  ;;  %p2043_p5 = pnand %p2042_p4, %p2036_p1 }
 0x2fa   :  { %1746 = vmatpush3.xpose.msra.mxu1 %v881_v59  ;;  %v2337_v61 = vpop.f32.mrf.mxu0 }
 0x2fb   :  { %1747 = vmatprep.subr.mxu1 %v2091_v13 }
 0x2fc   :  { %v2340_v39 = vpop.f32.mrf.mxu0 }
 0x2fe   :  { %1748 = vmatpush3.xpose.msra.mxu1 %v880_v1  ;;  %v2344_v2 = vpop.f32.mrf.mxu0 }
 0x2ff   :  { %1749 = vmatprep.subr.mxu1 %v2091_v13  ;;  %v1675_v1 = vadd.f32 %v2344_v2, %v2340_v39 }
 0x300   :  { %v2347_v36 = vpop.f32.mrf.mxu0 }
 0x302   :  { %1750 = vmatpush3.xpose.msra.mxu1 %v879_v5  ;;  %v2351_v7 = vpop.f32.mrf.mxu0 }
 0x303   :  { %1751 = vmatprep.subr.mxu1 %v2091_v13  ;;  %v1678_v58 = vadd.f32 %v2351_v7, %v2347_v36  ;;  %v1672_v36 = vadd.f32 %v2337_v61, %v2333_v56  ;;  %v1269_v7 = vadd.f32 %v1675_v1, %v2296_v55 }
 0x304   :  { %v1679_v33 = vpop.f32.mrf.mxu0 }
 0x305   :  { %v1274_v3 = vadd.f32 %v1678_v58, %v2296_v55  ;;  %v1266_v39 = vadd.f32 %v1672_v36, %v2296_v55  ;;  %v1321_v2 = vmul.f32 0.2, %v1269_v7  ;;  %vm1305_vm8 = vcmp.gt.f32.partialorder %v1269_v7, 0.0 }
 0x306   :  { %1752 = vmatpush3.xpose.msra.mxu1 %v878_v10  ;;  %v1680_v11 = vpop.f32.mrf.mxu0  ;;  %v1261_v10 = vadd.f32 %v2330_v60, %v2296_v55 }
 0x307   :  { %1753 = vmatprep.subr.mxu1 %v2091_v13  ;;  %v1681_v52 = vadd.f32 %v1680_v11, %v1679_v33  ;;  %v1322_v33 = vmul.f32 0.2, %v1274_v3  ;;  %vm1306_vm7 = vcmp.gt.f32.partialorder %v1274_v3, 0.0  ;;  %v1320_v56 = vmul.f32 0.2, %v1266_v39 }
 0x308   :  { %v1682_v29 = vpop.f32.mrf.mxu0  ;;  %v1337_v61 = vsel %vm1305_vm8, %v1269_v7, %v1321_v2  ;;  %vm1304_vm9 = vcmp.gt.f32.partialorder %v1266_v39, 0.0  ;;  %v1258_v11 = vadd.f32 %v2325_v40, %v2296_v55  ;;  %vm1303_vm10 = vcmp.gt.f32.partialorder %v1261_v10, 0.0 }
 0x309   :  { %v1277_v59 = vadd.f32 %v1681_v52, %v2296_v55  ;;  %v1338_v9 = vsel %vm1306_vm7, %v1274_v3, %v1322_v33  ;;  %v1336_v12 = vsel %vm1304_vm9, %v1266_v39, %v1320_v56 }
 0x30a   :  { %1754 = vmatpush3.xpose.msra.mxu1 %v877_v17  ;;  %v1683_v18 = vpop.f32.mrf.mxu0  ;;  %v1318_v17 = vmul.f32 0.2, %v1258_v11  ;;  %vm1302_vm11 = vcmp.gt.f32.partialorder %v1258_v11, 0.0 }
 0x30b   :  { %1755 = vmatprep.subr.mxu1 %v2091_v13  ;;  %v1684_v49 = vadd.f32 %v1683_v18, %v1682_v29  ;;  %v1323_v4 = vmul.f32 0.2, %v1277_v59  ;;  %vm1307_vm6 = vcmp.gt.f32.partialorder %v1277_v59, 0.0  ;;  %v1319_v29 = vmul.f32 0.2, %v1261_v10 }
 0x30c   :  { %v1685_v20 = vpop.f32.mrf.mxu0  ;;  %v1250_v18 = vadd.f32 %v2315_v37, %v2296_v55  ;;  %v1334_v40 = vsel %vm1302_vm11, %v1258_v11, %v1318_v17 }
 0x30d   :  { %v1282_v53 = vadd.f32 %v1684_v49, %v2296_v55  ;;  %v1339_v8 = vsel %vm1307_vm6, %v1277_v59, %v1323_v4  ;;  %v1335_v60 = vsel %vm1303_vm10, %v1261_v10, %v1319_v29 }
 0x30e   :  { %1756 = vmatpush3.xpose.msra.mxu1 %v876_v23  ;;  %v1686_v27 = vpop.f32.mrf.mxu0  ;;  %v1316_v21 = vmul.f32 0.2, %v1250_v18  ;;  %vm1300_vm13 = vcmp.gt.f32.partialorder %v1250_v18, 0.0  ;;  %v1242_v23 = vadd.f32 %v2307_v14, %v2296_v55 }
 0x30f   :  { %1757 = vmatprep.subr.mxu1 %v2091_v13  ;;  %v1687_v46 = vadd.f32 %v1686_v27, %v1685_v20  ;;  %v1324_v62 = vmul.f32 0.2, %v1282_v53  ;;  %v1317_v20 = vmul.f32 0.2, %v1253_v15  ;;  %v1315_v27 = vmul.f32 0.2, %v1245_v25 }
 0x310   :  { %v1688_v28 = vpop.f32.mrf.mxu0  ;;  %v1332_v37 = vsel %vm1300_vm13, %v1250_v18, %v1316_v21  ;;  %v1314_v22 = vmul.f32 0.2, %v1242_v23  ;;  %vm1298_vm15 = vcmp.gt.f32.partialorder %v1242_v23, 0.0 }
 0x311   :  { %v1285_v50 = vadd.f32 %v1687_v46, %v2296_v55  ;;  %v1333_v43 = vsel %vm1301_vm12, %v1253_v15, %v1317_v20  ;;  %v1331_v24 = vsel %vm1299_vm14, %v1245_v25, %v1315_v27 }
 0x312   :  { %1758 = vmatpush3.xpose.msra.mxu1 %v875_v31  ;;  %v1689_v34 = vpop.f32.mrf.mxu0  ;;  %v1330_v14 = vsel %vm1298_vm15, %v1242_v23, %v1314_v22 }
 0x313   :  { %1759 = vmatprep.subr.mxu1 %v2091_v13  ;;  %v1690_v38 = vadd.f32 %v1689_v34, %v1688_v28  ;;  %v1325_v54 = vmul.f32 0.2, %v1285_v50  ;;  %vm1309_vm5 = vcmp.gt.f32.partialorder %v1285_v50, 0.0  ;;  %v1237_v28 = vadd.f32 %v2303_v6, %v2296_v55 }
 0x314   :  { %v1691_v35 = vpop.f32.mrf.mxu0  ;;  %v1312_v34 = vmul.f32 0.2, %v1234_v30 }
 0x315   :  { %v1290_v16 = vadd.f32 %v1690_v38, %v2296_v55  ;;  %v1341_v0 = vsel %vm1309_vm5, %v1285_v50, %v1325_v54  ;;  %v1313_v31 = vmul.f32 0.2, %v1237_v28  ;;  %vm1297_vm0 = vcmp.gt.f32.partialorder %v1237_v28, 0.0 }
 0x316   :  { %1760 = vmatpush3.xpose.msra.mxu1 %v874_v44  ;;  %v1692_v32 = vpop.f32.mrf.mxu0  ;;  %v1328_v6 = vsel %vm1296_vm2, %v1234_v30, %v1312_v34 }
 0x317   :  { %v1693_v45 = vadd.f32 %v1692_v32, %v1691_v35  ;;  %1761 = vmatprep.subr.mxu1 %v2091_v13  ;;  %v1326_v41 = vmul.f32 0.2, %v1290_v16  ;;  %vm1310_vm4 = vcmp.gt.f32.partialorder %v1290_v16, 0.0  ;;  %v1329_v35 = vsel %vm1297_vm0, %v1237_v28, %v1313_v31 }
 0x319   :  { %v1293_v42 = vadd.f32 %v1693_v45, %v2296_v55  ;;  %v1342_v57 = vsel %vm1310_vm4, %v1290_v16, %v1326_v41  ;;  %v890_v55 = vstv %s2439_s9 }
 0x31a   :  { %1762 = vmatpush3.xpose.msra.mxu1 %v873_v47 }
 0x31b   :  { %v1327_v26 = vmul.f32 0.2, %v1293_v42  ;;  %1766 = vmatprep.subr.mxu1 %v2091_v13  ;;  %vm1311_vm3 = vcmp.gt.f32.partialorder %v1293_v42, 0.0 }
 0x31d   :  { %1764 = vmatmul.mubr.f32.vlgmr.msra.gmra.mxu1 %v889_v48  ;;  %v1343_v51 = vsel %vm1311_vm3, %v1293_v42, %v1327_v26 }
 0x31e   :  { %1767 = vmatpush3.xpose.msra.mxu1 %v1343_v51  ;;  %1798 = vmatprep.mubr.msk.f32.mxu1 %vm2092_vm1, %v2091_v13  ;;  %vm1308_vm1 = vcmp.gt.f32.partialorder %v1282_v53, 0.0 }
 0x31f   :  { %1768 = vmatprep.subr.mxu1 %v2091_v13  ;;  %v1340_v5 = vsel %vm1308_vm1, %v1282_v53, %v1324_v62 }
 0x322   :  { %1769 = vmatpush3.xpose.msra.mxu1 %v1342_v57 }
 0x323   :  { %1770 = vmatprep.subr.mxu1 %v2091_v13 }
 0x326   :  { %1771 = vmatpush3.xpose.msra.mxu1 %v1341_v0 }
 0x327   :  { %1772 = vmatprep.subr.mxu1 %v2091_v13 }
 0x32a   :  { %1773 = vmatpush3.xpose.msra.mxu1 %v1340_v5 }
 0x32b   :  { %1774 = vmatprep.subr.mxu1 %v2091_v13 }
 0x32e   :  { %1775 = vmatpush3.xpose.msra.mxu1 %v1339_v8 }
 0x32f   :  { %1776 = vmatprep.subr.mxu1 %v2091_v13 }
 0x332   :  { %1777 = vmatpush3.xpose.msra.mxu1 %v1338_v9 }
 0x333   :  { %1778 = vmatprep.subr.mxu1 %v2091_v13 }
 0x336   :  { %1779 = vmatpush3.xpose.msra.mxu1 %v1337_v61 }
 0x337   :  { %1780 = vmatprep.subr.mxu1 %v2091_v13 }
 0x33a   :  { %1781 = vmatpush3.xpose.msra.mxu1 %v1336_v12 }
 0x33b   :  { %1782 = vmatprep.subr.mxu1 %v2091_v13 }
 0x33e   :  { %1783 = vmatpush3.xpose.msra.mxu1 %v1335_v60 }
 0x33f   :  { %1784 = vmatprep.subr.mxu1 %v2091_v13 }
 0x342   :  { %1785 = vmatpush3.xpose.msra.mxu1 %v1334_v40 }
 0x343   :  { %1786 = vmatprep.subr.mxu1 %v2091_v13 }
 0x346   :  { %1787 = vmatpush3.xpose.msra.mxu1 %v1333_v43 }
 0x347   :  { %1788 = vmatprep.subr.mxu1 %v2091_v13 }
 0x34a   :  { %1789 = vmatpush3.xpose.msra.mxu1 %v1332_v37 }
 0x34b   :  { %1790 = vmatprep.subr.mxu1 %v2091_v13 }
 0x34e   :  { %1791 = vmatpush3.xpose.msra.mxu1 %v1331_v24 }
 0x34f   :  { %1792 = vmatprep.subr.mxu1 %v2091_v13 }
 0x352   :  { %1793 = vmatpush3.xpose.msra.mxu1 %v1330_v14 }
 0x353   :  { %1794 = vmatprep.subr.mxu1 %v2091_v13 }
 0x356   :  { %1795 = vmatpush3.xpose.msra.mxu1 %v1329_v35 }
 0x357   :  { %1796 = vmatprep.subr.mxu1 %v2091_v13 }
 0x35a   :  { %1797 = vmatpush3.xpose.msra.mxu1 %v1328_v6 }
 0x35d   :  { %1799 = vmatmul.mubr.f32.vlgmr.msra.gmra.mxu1 %v1344_v19 }
 0x3dd   :  { %v957_v63 = vpop.f32.mrf.mxu1 }
 0x3de   :  { %v958_v38 = vadd.f32 %v957_v63, %v890_v55 }
 0x3df   :  { %v1765_v44 = vpop.f32.mrf.mxu1 }
 0x3e0   :  { %v1504_v32 = vmul.f32 -1.442695, %v958_v38 }
 0x3e2   :  { %1967 = vpow2.f32 %v1504_v32 }
 0x3ef   :  { %v1968_v45 = vpop.eup %1967 }
 0x3f0   :  { %v964_v46 = vadd.f32 1.0, %v1968_v45 }
 0x3f2   :  { %1969 = vrcp.f32 %v964_v46 }
 0x3ff   :  { %v1970_v13 = vpop.eup %1969 }
 0x400   :  { %967 = vst [vmem:[#allocation9] sm:$0x1] %v1970_v13 }
 0x401   :  { %2046 = shalt.err (!%p2043_p5)
}
 0x402   :  { %1431 = dma.vmem_to_hbm [thread:$0]  %s1429_s6, 16, %s2440_s10, [#allocation5]  }
 0x403   :  { %s2094_s23 = smov [#allocation10]  }
 0x404   :  { %s1438_s2 = sshll.u32 %s2094_s23, 4  ;;  %s1439_s2 = int_to_ptr.vmem [resolvable:$true] %s1438_s2 }
 0x405   :  { %s2055_s24 = scalar_lea.vmem %s1439_s2, 16  ;;  %s2059_s25 = scalar_lea.vmem %s1439_s2, 32 }
 0x406   :  { %p2056_p6 = scmp.ne.s32.totalorder %s1439_s2, %s2055_s24  ;;  %p2060_p7 = scmp.lt.s32.totalorder %s1439_s2, %s1439_s2 }
 0x407   :  { %p2061_p8 = scmp.lt.s32.totalorder %s2059_s25, %s2055_s24 }
 0x409   :  { %p2062_p9 = por %p2061_p8, %p2060_p7 }
 0x40b   :  { %p2063_p10 = pnand %p2062_p9, %p2056_p6 }
 0x41d   :  { %v1411_v16 = vpop.f32.mrf.mxu1 }
 0x41e   :  { %v1412_v42 = vadd.f32 %v1411_v16, %v890_v55 }
 0x41f   :  { %v1800_v47 = vpop.f32.mrf.mxu1 }
 0x420   :  { %v1538_v48 = vmul.f32 -1.442695, %v1412_v42 }
 0x422   :  { %1971 = vpow2.f32 %v1538_v48 }
 0x42f   :  { %v1972_v26 = vpop.eup %1971 }
 0x430   :  { %v1418_v49 = vadd.f32 1.0, %v1972_v26 }
 0x432   :  { %1973 = vrcp.f32 %v1418_v49 }
 0x43f   :  { %v1974_v50 = vpop.eup %1973 }
 0x440   :  { %1421 = vst [vmem:[#allocation10] sm:$0x1] %v1974_v50 }
 0x441   :  { %2066 = shalt.err (!%p2063_p10)
}
 0x442   :  { %1441 = dma.vmem_to_hbm [thread:$0]  %s1439_s2, 16, %s2441_s11, [#allocation11]  }
 0x443   :  { %2079 = dma.done.wait [#allocation5], 16  }
 0x444   :  { %2080 = vsyncadd [#allocation5], 4294967280 }
 0x445   :  { %2081 = dma.done.wait [#allocation11], 16  }
 0x446   :  { %2082 = vsyncadd [#allocation11], 4294967280 }
 0x447   :  { %1448 = vsyncpa [#allocation4], 1 }
 0x448   :  { %1449 = vsyncpa [#allocation7], 1 }
 0x449   :  { %1450 = vsyncpa [#allocation5], 1 }
 0x44a   :  { %1451 = vsyncpa [#allocation11], 1 }

</bundles_post_ra>
